<compile_context>
chip_gen: v7x
topology: tpu7x:2x2x1
jax: 0.10.0
libtpu: 0.0.40
codegen_flags: <defaults>
</compile_context>

<pallas_src>
import functools

import jax
import jax.numpy as jnp
from jax.experimental import pallas as pl
from jax.experimental.pallas import tpu as pltpu

LANE = 128


# --------------------------------------------------------------------------- #
# Kernel
# --------------------------------------------------------------------------- #
def graph_layer_kernel(x_ref, sup_ref, mask_ref,
                       w_enc_ref, w0_ref, w1_ref, wh1_ref,
                       b_enc_ref, b0_ref, b1_ref, bh1_ref,
                       out_ref, *, steps):
    bb, n, dp = out_ref.shape
    rows = bb * n
    din = x_ref.shape[-1]
    mm_dtype = w0_ref.dtype          # weights are pre-cast on the host

    def mm(a, w):                    # MXU matmul, f32 accumulation
        return jnp.dot(a.astype(mm_dtype), w,
                       preferred_element_type=jnp.float32)

    # ---- hoisted loads (no materialized broadcasts) -----------------------
    # x may already be bf16 (host pre-cast); reshape is a layout no-op when
    # n % 8 == 0 (sublane-aligned).
    x = x_ref[...].reshape(rows, din)
    sup = sup_ref[...]                         # f32: aggregation stays f32
    m2 = mask_ref[...].reshape(rows, 1)        # (rows, 1) -> lane broadcast
    w_enc = w_enc_ref[...]
    w0 = w0_ref[...]                           # [w_z0 | w_r0 | w_h0]
    w1 = w1_ref[...]                           # [w_z1 | w_r1]
    wh1 = wh1_ref[...]
    b_enc = b_enc_ref[...]                     # (1, dp)   — broadcast in add
    b0 = b0_ref[...]                           # (1, 3*dp)
    b1 = b1_ref[...]                           # (1, 2*dp)
    bh1 = bh1_ref[...]                         # (1, dp)

    # ---- encode: h = mask * relu(x @ W_enc + b_enc) -----------------------
    h = m2 * jnp.maximum(mm(x, w_enc) + b_enc, 0.0)          # (rows, dp) f32

    # ---- GRU steps (steps is a compile-time constant) ---------------------
    for _ in range(steps):
        h3 = h.reshape(bb, n, dp)              # layout no-op when n % 8 == 0
        if n <= 32:
            # Small-N: VPU multiply-accumulate over neighbours (avoids BB
            # tiny latency-bound MXU matmuls).  f32 throughout.
            a3 = sup[:, :, 0:1] * h3[:, 0:1, :]
            for m in range(1, n):
                a3 = a3 + sup[:, :, m:m + 1] * h3[:, m:m + 1, :]
        else:
            # Large-N: batched MXU matmul (f32 operands for accuracy).
            a3 = jnp.einsum('bnm,bmd->bnd', sup, h3,
                            preferred_element_type=jnp.float32)
        a = a3.reshape(rows, dp)

        g0 = mm(a, w0) + b0                    # [z0 | r0 | h0]   (rows, 3dp)
        g1 = mm(h, w1) + b1                    # [z1 | r1]        (rows, 2dp)
        z = jax.nn.sigmoid(g0[:, :dp] + g1[:, :dp])
        r = jax.nn.sigmoid(g0[:, dp:2 * dp] + g1[:, dp:])
        hh = jnp.maximum(m2 * (g0[:, 2 * dp:] + mm(r * h, wh1) + bh1), 0.0)
        h = hh * z + h * (1.0 - z)             # all elementwise math in f32

    out_ref[...] = h.reshape(bb, n, dp).astype(out_ref.dtype)


# --------------------------------------------------------------------------- #
# Host-side helpers / wrapper
# --------------------------------------------------------------------------- #
def _pad_to(arr, axis, target):
    pad = target - arr.shape[axis]
    if pad <= 0:
        return arr
    widths = [(0, 0)] * arr.ndim
    widths[axis] = (0, pad)
    return jnp.pad(arr, widths)


def _default_vmem_limit_bytes():
    kind = ""
    try:
        kind = jax.devices()[0].device_kind.lower()
    except Exception:
        pass
    if "v7" in kind:
        return 44 * 1024 * 1024          # v7x: 64 MiB physical per TC
    if "v5 lite" in kind or "v5e" in kind or "v6" in kind:
        return 96 * 1024 * 1024          # v5e/v6e: 128 MiB physical
    return 40 * 1024 * 1024              # conservative fallback


def graph_layer(x, support, mask, params, *, steps=2, block_b=None,
                matmul_dtype=jnp.bfloat16, return_padded=False,
                vmem_limit_bytes=None):
    B, N, Din = x.shape
    Dout = params["w_enc"].shape[1]
    Dp = max(LANE, ((Dout + LANE - 1) // LANE) * LANE)
    f32 = jnp.float32

    # ---- host-side weight packing / zero padding (exact) ------------------
    def pad_cols(w):
        return _pad_to(w.astype(f32), 1, Dp)

    def pad_square(name):
        return _pad_to(pad_cols(params[name]), 0, Dp)

    def pad_bias(name):
        return _pad_to(params[name].astype(f32).reshape(1, Dout), 1, Dp)

    w_enc = pad_cols(params["w_enc"])                                  # (Din, Dp)
    w0 = jnp.concatenate(
        [pad_square("w_z0"), pad_square("w_r0"), pad_square("w_h0")], axis=1)
    w1 = jnp.concatenate([pad_square("w_z1"), pad_square("w_r1")], axis=1)
    wh1 = pad_square("w_h1")
    # Pre-cast MXU weight operands on the host (halves DMA + resident VMEM
    # for the bf16 default path).  Biases stay f32.
    w_enc, w0, w1, wh1 = (w.astype(matmul_dtype) for w in (w_enc, w0, w1, wh1))
    b_enc = pad_bias("b_enc")
    b0 = jnp.concatenate(
        [pad_bias("b_z0"), pad_bias("b_r0"), pad_bias("b_h0")], axis=1)
    b1 = jnp.concatenate([pad_bias("b_z1"), pad_bias("b_r1")], axis=1)
    bh1 = pad_bias("b_h1")
    consts = [w_enc, w0, w1, wh1, b_enc, b0, b1, bh1]

    # ---- batch block: tall MXU M-dim, grid >= 2 for v7x, VMEM-aware -------
    if block_b is None:
        sub = 16 if matmul_dtype == jnp.bfloat16 else 8
        max_bb = max(1, min(1024 // max(N, 1),               # rows <= ~1024
                            (8 << 20) // max(4 * N * N, 1),  # sup block <= 8 MiB
                            max(1, B // 2)))                 # >= 2 grid steps
        cands = [c for c in range(1, B + 1) if B % c == 0 and c <= max_bb]

        def score(c):
            rows = c * N
            return (rows % 256 == 0, rows % sub == 0, c)

        block_b = max(cands, key=score)
    BB = block_b
    assert B % BB == 0, "block_b must divide the batch size"
    grid = (B // BB,)

    if vmem_limit_bytes is None:
        vmem_limit_bytes = _default_vmem_limit_bytes()

    def batched(shape):
        return pl.BlockSpec((BB,) + shape, lambda b: (b, 0, 0))

    def shared(arr):
        # Constant index_map -> fetched once; single-buffer to save VMEM.
        return pl.BlockSpec(arr.shape, lambda b: (0, 0),
                            pipeline_mode=pl.Buffered(1))

    in_specs = ([batched((N, Din)), batched((N, N)), batched((N, 1))]
                + [shared(c) for c in consts])
    out_specs = batched((N, Dp))

    # ---- advisory cost estimate -------------------------------------------
    flops = 2 * B * N * Din * Dp + 2 * B * steps * N * (N * Dp + 6 * Dp * Dp)
    transcendentals = 2 * B * steps * N * Dp

    x_in = x.astype(matmul_dtype)        # host pre-cast (halves x DMA in bf16)
    sup_in = support.astype(f32)         # aggregation kept f32 (accuracy)
    mask_in = mask.astype(f32)

    def nbytes(a):
        return int(a.size) * int(jnp.dtype(a.dtype).itemsize)

    bytes_accessed = (nbytes(x_in) + nbytes(sup_in) + nbytes(mask_in)
                      + sum(nbytes(c) for c in consts) + B * N * Dp * 4)
    cost = pl.CostEstimate(flops=int(flops),
                           transcendentals=int(transcendentals),
                           bytes_accessed=int(bytes_accessed))

    kernel = functools.partial(graph_layer_kernel, steps=steps)

    out_p = pl.pallas_call(
        kernel,
        grid=grid,
        in_specs=in_specs,
        out_specs=out_specs,
        out_shape=jax.ShapeDtypeStruct((B, N, Dp), jnp.float32),
        compiler_params=pltpu.CompilerParams(
            dimension_semantics=("parallel",),
            vmem_limit_bytes=int(vmem_limit_bytes)),
        cost_estimate=cost,
    )(x_in, sup_in, mask_in, *consts)

    if return_padded or Dp == Dout:
        return out_p                      # lane-dense padded layout, no copy
    # NOTE: this slice is an extra XLA copy; pass return_padded=True if the
    # consumer can take the (B, N, Dp) layout (padded columns are exactly 0).
    return out_p[:, :, :Dout]


# --------------------------------------------------------------------------- #
# Parameter init + pure-JAX reference
# --------------------------------------------------------------------------- #
def _xavier_uniform(key, fan_in, fan_out):
    bound = jnp.sqrt(6.0 / (fan_in + fan_out)).astype(jnp.float32)
    return jax.random.uniform(key, (fan_in, fan_out), jnp.float32,
                              minval=-bound, maxval=bound)


def init_params(key, input_dim, output_dim):
    keys = jax.random.split(key, 7)
    params = {
        "w_enc": _xavier_uniform(keys[0], input_dim, output_dim),
        "w_z0": _xavier_uniform(keys[1], output_dim, output_dim),
        "w_z1": _xavier_uniform(keys[2], output_dim, output_dim),
        "w_r0": _xavier_uniform(keys[3], output_dim, output_dim),
        "w_r1": _xavier_uniform(keys[4], output_dim, output_dim),
        "w_h0": _xavier_uniform(keys[5], output_dim, output_dim),
        "w_h1": _xavier_uniform(keys[6], output_dim, output_dim),
    }
    for name in ("b_enc", "b_z0", "b_z1", "b_r0", "b_r1", "b_h0", "b_h1"):
        params[name] = jnp.zeros((output_dim,), jnp.float32)
    return params


def graph_layer_reference(x, support, mask, params, *, steps=2):
    """Pure-JAX reference mirroring the PyTorch forward pass (f32)."""
    h = mask * jax.nn.relu(x @ params["w_enc"] + params["b_enc"])
    for _ in range(steps):
        a = support @ h
        z = jax.nn.sigmoid(a @ params["w_z0"] + params["b_z0"]
                           + h @ params["w_z1"] + params["b_z1"])
        r = jax.nn.sigmoid(a @ params["w_r0"] + params["b_r0"]
                           + h @ params["w_r1"] + params["b_r1"])
        hh = jax.nn.relu(mask * (a @ params["w_h0"] + params["b_h0"]
                                 + (r * h) @ params["w_h1"] + params["b_h1"]))
        h = hh * z + h * (1.0 - z)
    return h


# TODO(synk): dropout (p=0.0 default) and the sparse_inputs=True path of the
# module are identity / unused here and are not implemented in the kernel.
if __name__ == "__main__":
    B, N, Din, Dout = 4, 8, 16, 32
    steps = 2

    key = jax.random.PRNGKey(0)
    k_x, k_sup, k_mask, k_par = jax.random.split(key, 4)

    x = jax.random.normal(k_x, (B, N, Din), jnp.float32)
    support = jax.random.normal(k_sup, (B, N, N), jnp.float32)
    mask = (jax.random.uniform(k_mask, (B, N, 1)) > 0.2).astype(jnp.float32)
    params = init_params(k_par, Din, Dout)

    ref = graph_layer_reference(x, support, mask, params, steps=steps)

    # f32 MXU path: tight parity with the reference.
    out_f32 = graph_layer(x, support, mask, params, steps=steps,
                          matmul_dtype=jnp.float32)
    out_f32 = jax.block_until_ready(out_f32)
    assert out_f32.shape == (B, N, Dout)
    assert jnp.allclose(out_f32, ref, atol=1e-3, rtol=1e-3), "f32 mismatch vs ref"

    # Default fast path: bf16 MXU inputs, f32 accumulation, f32 aggregation.
    out_bf16 = graph_layer(x, support, mask, params, steps=steps)
    out_bf16 = jax.block_until_ready(out_bf16)
    assert out_bf16.shape == (B, N, Dout)
    scale = max(float(jnp.max(jnp.abs(ref))), 1.0)
    rel_err = float(jnp.max(jnp.abs(out_bf16 - ref))) / scale
    assert rel_err < 0.1, f"bf16 path relative error too large: {rel_err:.4f}"

    print("KERNEL_OK")
</pallas_src>

<mosaic_0001>
module attributes {stable_mosaic.version = 11 : i64} {
  func.func @graph_layer_kernel(%arg0: i32, %arg1: memref<2x8x16xf32, #tpu.memory_space<vmem>>, %arg2: memref<2x8x8xf32, #tpu.memory_space<vmem>>, %arg3: memref<2x8x1xf32, #tpu.memory_space<vmem>>, %arg4: memref<16x128xf32, #tpu.memory_space<vmem>>, %arg5: memref<128x384xf32, #tpu.memory_space<vmem>>, %arg6: memref<128x256xf32, #tpu.memory_space<vmem>>, %arg7: memref<128x128xf32, #tpu.memory_space<vmem>>, %arg8: memref<1x128xf32, #tpu.memory_space<vmem>>, %arg9: memref<1x384xf32, #tpu.memory_space<vmem>>, %arg10: memref<1x256xf32, #tpu.memory_space<vmem>>, %arg11: memref<1x128xf32, #tpu.memory_space<vmem>>, %arg12: memref<2x8x128xf32, #tpu.memory_space<vmem>>) attributes {dimension_semantics = [#tpu.dimension_semantics<parallel>], iteration_bounds = array<i64: 2>, scalar_prefetch = 0 : i64, scratch_operands = 0 : i64, tpu.core_type = #tpu.core_type<tc>, window_params = [{transform_indices = @transform_0, window_bounds = array<i64: 2, 8, 16>}, {transform_indices = @transform_1, window_bounds = array<i64: 2, 8, 8>}, {transform_indices = @transform_2, window_bounds = array<i64: 2, 8, 1>}, {pipeline_mode = #tpu.pipeline_mode<synchronous>, transform_indices = @transform_3, window_bounds = array<i64: 16, 128>}, {pipeline_mode = #tpu.pipeline_mode<synchronous>, transform_indices = @transform_4, window_bounds = array<i64: 128, 384>}, {pipeline_mode = #tpu.pipeline_mode<synchronous>, transform_indices = @transform_5, window_bounds = array<i64: 128, 256>}, {pipeline_mode = #tpu.pipeline_mode<synchronous>, transform_indices = @transform_6, window_bounds = array<i64: 128, 128>}, {pipeline_mode = #tpu.pipeline_mode<synchronous>, transform_indices = @transform_7, window_bounds = array<i64: 1, 128>}, {pipeline_mode = #tpu.pipeline_mode<synchronous>, transform_indices = @transform_8, window_bounds = array<i64: 1, 384>}, {pipeline_mode = #tpu.pipeline_mode<synchronous>, transform_indices = @transform_9, window_bounds = array<i64: 1, 256>}, {pipeline_mode = #tpu.pipeline_mode<synchronous>, transform_indices = @transform_10, window_bounds = array<i64: 1, 128>}, {transform_indices = @transform_11, window_bounds = array<i64: 2, 8, 128>}]} {
    %c0 = arith.constant 0 : index
    %c0_0 = arith.constant 0 : index
    %c0_1 = arith.constant 0 : index
    %0 = vector.load %arg1[%c0, %c0_0, %c0_1] : memref<2x8x16xf32, #tpu.memory_space<vmem>>, vector<2x8x16xf32>
    %1 = vector.shape_cast %0 : vector<2x8x16xf32> to vector<16x16xf32>
    %c0_2 = arith.constant 0 : index
    %c0_3 = arith.constant 0 : index
    %c0_4 = arith.constant 0 : index
    %2 = vector.load %arg2[%c0_2, %c0_3, %c0_4] : memref<2x8x8xf32, #tpu.memory_space<vmem>>, vector<2x8x8xf32>
    %c0_5 = arith.constant 0 : index
    %c0_6 = arith.constant 0 : index
    %c0_7 = arith.constant 0 : index
    %3 = vector.load %arg3[%c0_5, %c0_6, %c0_7] : memref<2x8x1xf32, #tpu.memory_space<vmem>>, vector<2x8x1xf32>
    %4 = vector.shape_cast %3 : vector<2x8x1xf32> to vector<16x1xf32>
    %c0_8 = arith.constant 0 : index
    %c0_9 = arith.constant 0 : index
    %5 = vector.load %arg4[%c0_8, %c0_9] : memref<16x128xf32, #tpu.memory_space<vmem>>, vector<16x128xf32>
    %c0_10 = arith.constant 0 : index
    %c0_11 = arith.constant 0 : index
    %6 = vector.load %arg5[%c0_10, %c0_11] : memref<128x384xf32, #tpu.memory_space<vmem>>, vector<128x384xf32>
    %c0_12 = arith.constant 0 : index
    %c0_13 = arith.constant 0 : index
    %7 = vector.load %arg6[%c0_12, %c0_13] : memref<128x256xf32, #tpu.memory_space<vmem>>, vector<128x256xf32>
    %c0_14 = arith.constant 0 : index
    %c0_15 = arith.constant 0 : index
    %8 = vector.load %arg7[%c0_14, %c0_15] : memref<128x128xf32, #tpu.memory_space<vmem>>, vector<128x128xf32>
    %c0_16 = arith.constant 0 : index
    %c0_17 = arith.constant 0 : index
    %9 = vector.load %arg8[%c0_16, %c0_17] : memref<1x128xf32, #tpu.memory_space<vmem>>, vector<1x128xf32>
    %c0_18 = arith.constant 0 : index
    %c0_19 = arith.constant 0 : index
    %10 = vector.load %arg9[%c0_18, %c0_19] : memref<1x384xf32, #tpu.memory_space<vmem>>, vector<1x384xf32>
    %c0_20 = arith.constant 0 : index
    %c0_21 = arith.constant 0 : index
    %11 = vector.load %arg10[%c0_20, %c0_21] : memref<1x256xf32, #tpu.memory_space<vmem>>, vector<1x256xf32>
    %c0_22 = arith.constant 0 : index
    %c0_23 = arith.constant 0 : index
    %12 = vector.load %arg11[%c0_22, %c0_23] : memref<1x128xf32, #tpu.memory_space<vmem>>, vector<1x128xf32>
    %cst = arith.constant dense<0.000000e+00> : vector<16x128xf32>
    %13 = tpu.matmul %1, %5, %cst {dimension_numbers = #tpu.dot_dimension_numbers<[1], [0], [0], [1], [0, 0, 1, 1], [], []>} : vector<16x16xf32>, vector<16x128xf32>, vector<16x128xf32> -> vector<16x128xf32>
    %14 = vector.broadcast %9 : vector<1x128xf32> to vector<16x128xf32>
    %15 = arith.addf %13, %14 : vector<16x128xf32>
    %cst_24 = arith.constant 0.000000e+00 : f32
    %16 = vector.broadcast %cst_24 : f32 to vector<16x128xf32>
    %17 = arith.maximumf %15, %16 : vector<16x128xf32>
    %18 = vector.broadcast %4 : vector<16x1xf32> to vector<16x128xf32>
    %19 = arith.mulf %18, %17 : vector<16x128xf32>
    %20 = vector.shape_cast %19 : vector<16x128xf32> to vector<2x8x128xf32>
    %21 = vector.extract_strided_slice %2 {offsets = [0, 0, 0], sizes = [2, 8, 1], strides = [1, 1, 1]} : vector<2x8x8xf32> to vector<2x8x1xf32>
    %22 = vector.extract_strided_slice %20 {offsets = [0, 0, 0], sizes = [2, 1, 128], strides = [1, 1, 1]} : vector<2x8x128xf32> to vector<2x1x128xf32>
    %23 = vector.broadcast %21 : vector<2x8x1xf32> to vector<2x8x128xf32>
    %24 = vector.broadcast %22 : vector<2x1x128xf32> to vector<2x8x128xf32>
    %25 = arith.mulf %23, %24 : vector<2x8x128xf32>
    %26 = vector.extract_strided_slice %2 {offsets = [0, 0, 1], sizes = [2, 8, 1], strides = [1, 1, 1]} : vector<2x8x8xf32> to vector<2x8x1xf32>
    %27 = vector.extract_strided_slice %20 {offsets = [0, 1, 0], sizes = [2, 1, 128], strides = [1, 1, 1]} : vector<2x8x128xf32> to vector<2x1x128xf32>
    %28 = vector.broadcast %26 : vector<2x8x1xf32> to vector<2x8x128xf32>
    %29 = vector.broadcast %27 : vector<2x1x128xf32> to vector<2x8x128xf32>
    %30 = arith.mulf %28, %29 : vector<2x8x128xf32>
    %31 = arith.addf %25, %30 : vector<2x8x128xf32>
    %32 = vector.extract_strided_slice %2 {offsets = [0, 0, 2], sizes = [2, 8, 1], strides = [1, 1, 1]} : vector<2x8x8xf32> to vector<2x8x1xf32>
    %33 = vector.extract_strided_slice %20 {offsets = [0, 2, 0], sizes = [2, 1, 128], strides = [1, 1, 1]} : vector<2x8x128xf32> to vector<2x1x128xf32>
    %34 = vector.broadcast %32 : vector<2x8x1xf32> to vector<2x8x128xf32>
    %35 = vector.broadcast %33 : vector<2x1x128xf32> to vector<2x8x128xf32>
    %36 = arith.mulf %34, %35 : vector<2x8x128xf32>
    %37 = arith.addf %31, %36 : vector<2x8x128xf32>
    %38 = vector.extract_strided_slice %2 {offsets = [0, 0, 3], sizes = [2, 8, 1], strides = [1, 1, 1]} : vector<2x8x8xf32> to vector<2x8x1xf32>
    %39 = vector.extract_strided_slice %20 {offsets = [0, 3, 0], sizes = [2, 1, 128], strides = [1, 1, 1]} : vector<2x8x128xf32> to vector<2x1x128xf32>
    %40 = vector.broadcast %38 : vector<2x8x1xf32> to vector<2x8x128xf32>
    %41 = vector.broadcast %39 : vector<2x1x128xf32> to vector<2x8x128xf32>
    %42 = arith.mulf %40, %41 : vector<2x8x128xf32>
    %43 = arith.addf %37, %42 : vector<2x8x128xf32>
    %44 = vector.extract_strided_slice %2 {offsets = [0, 0, 4], sizes = [2, 8, 1], strides = [1, 1, 1]} : vector<2x8x8xf32> to vector<2x8x1xf32>
    %45 = vector.extract_strided_slice %20 {offsets = [0, 4, 0], sizes = [2, 1, 128], strides = [1, 1, 1]} : vector<2x8x128xf32> to vector<2x1x128xf32>
    %46 = vector.broadcast %44 : vector<2x8x1xf32> to vector<2x8x128xf32>
    %47 = vector.broadcast %45 : vector<2x1x128xf32> to vector<2x8x128xf32>
    %48 = arith.mulf %46, %47 : vector<2x8x128xf32>
    %49 = arith.addf %43, %48 : vector<2x8x128xf32>
    %50 = vector.extract_strided_slice %2 {offsets = [0, 0, 5], sizes = [2, 8, 1], strides = [1, 1, 1]} : vector<2x8x8xf32> to vector<2x8x1xf32>
    %51 = vector.extract_strided_slice %20 {offsets = [0, 5, 0], sizes = [2, 1, 128], strides = [1, 1, 1]} : vector<2x8x128xf32> to vector<2x1x128xf32>
    %52 = vector.broadcast %50 : vector<2x8x1xf32> to vector<2x8x128xf32>
    %53 = vector.broadcast %51 : vector<2x1x128xf32> to vector<2x8x128xf32>
    %54 = arith.mulf %52, %53 : vector<2x8x128xf32>
    %55 = arith.addf %49, %54 : vector<2x8x128xf32>
    %56 = vector.extract_strided_slice %2 {offsets = [0, 0, 6], sizes = [2, 8, 1], strides = [1, 1, 1]} : vector<2x8x8xf32> to vector<2x8x1xf32>
    %57 = vector.extract_strided_slice %20 {offsets = [0, 6, 0], sizes = [2, 1, 128], strides = [1, 1, 1]} : vector<2x8x128xf32> to vector<2x1x128xf32>
    %58 = vector.broadcast %56 : vector<2x8x1xf32> to vector<2x8x128xf32>
    %59 = vector.broadcast %57 : vector<2x1x128xf32> to vector<2x8x128xf32>
    %60 = arith.mulf %58, %59 : vector<2x8x128xf32>
    %61 = arith.addf %55, %60 : vector<2x8x128xf32>
    %62 = vector.extract_strided_slice %2 {offsets = [0, 0, 7], sizes = [2, 8, 1], strides = [1, 1, 1]} : vector<2x8x8xf32> to vector<2x8x1xf32>
    %63 = vector.extract_strided_slice %20 {offsets = [0, 7, 0], sizes = [2, 1, 128], strides = [1, 1, 1]} : vector<2x8x128xf32> to vector<2x1x128xf32>
    %64 = vector.broadcast %62 : vector<2x8x1xf32> to vector<2x8x128xf32>
    %65 = vector.broadcast %63 : vector<2x1x128xf32> to vector<2x8x128xf32>
    %66 = arith.mulf %64, %65 : vector<2x8x128xf32>
    %67 = arith.addf %61, %66 : vector<2x8x128xf32>
    %68 = vector.shape_cast %67 : vector<2x8x128xf32> to vector<16x128xf32>
    %cst_25 = arith.constant dense<0.000000e+00> : vector<16x384xf32>
    %69 = tpu.matmul %68, %6, %cst_25 {dimension_numbers = #tpu.dot_dimension_numbers<[1], [0], [0], [1], [0, 0, 1, 1], [], []>} : vector<16x128xf32>, vector<128x384xf32>, vector<16x384xf32> -> vector<16x384xf32>
    %70 = vector.broadcast %10 : vector<1x384xf32> to vector<16x384xf32>
    %71 = arith.addf %69, %70 : vector<16x384xf32>
    %cst_26 = arith.constant dense<0.000000e+00> : vector<16x256xf32>
    %72 = tpu.matmul %19, %7, %cst_26 {dimension_numbers = #tpu.dot_dimension_numbers<[1], [0], [0], [1], [0, 0, 1, 1], [], []>} : vector<16x128xf32>, vector<128x256xf32>, vector<16x256xf32> -> vector<16x256xf32>
    %73 = vector.broadcast %11 : vector<1x256xf32> to vector<16x256xf32>
    %74 = arith.addf %72, %73 : vector<16x256xf32>
    %75 = vector.extract_strided_slice %71 {offsets = [0, 0], sizes = [16, 128], strides = [1, 1]} : vector<16x384xf32> to vector<16x128xf32>
    %76 = vector.extract_strided_slice %74 {offsets = [0, 0], sizes = [16, 128], strides = [1, 1]} : vector<16x256xf32> to vector<16x128xf32>
    %77 = arith.addf %75, %76 : vector<16x128xf32>
    %78 = arith.negf %77 : vector<16x128xf32>
    %79 = math.exp %78 : vector<16x128xf32>
    %cst_27 = arith.constant 1.000000e+00 : f32
    %80 = vector.broadcast %cst_27 : f32 to vector<16x128xf32>
    %81 = arith.addf %80, %79 : vector<16x128xf32>
    %82 = arith.divf %80, %81 : vector<16x128xf32>
    %83 = vector.extract_strided_slice %71 {offsets = [0, 128], sizes = [16, 128], strides = [1, 1]} : vector<16x384xf32> to vector<16x128xf32>
    %84 = vector.extract_strided_slice %74 {offsets = [0, 128], sizes = [16, 128], strides = [1, 1]} : vector<16x256xf32> to vector<16x128xf32>
    %85 = arith.addf %83, %84 : vector<16x128xf32>
    %86 = arith.negf %85 : vector<16x128xf32>
    %87 = math.exp %86 : vector<16x128xf32>
    %cst_28 = arith.constant 1.000000e+00 : f32
    %88 = vector.broadcast %cst_28 : f32 to vector<16x128xf32>
    %89 = arith.addf %88, %87 : vector<16x128xf32>
    %90 = arith.divf %88, %89 : vector<16x128xf32>
    %91 = vector.extract_strided_slice %71 {offsets = [0, 256], sizes = [16, 128], strides = [1, 1]} : vector<16x384xf32> to vector<16x128xf32>
    %92 = arith.mulf %90, %19 : vector<16x128xf32>
    %cst_29 = arith.constant dense<0.000000e+00> : vector<16x128xf32>
    %93 = tpu.matmul %92, %8, %cst_29 {dimension_numbers = #tpu.dot_dimension_numbers<[1], [0], [0], [1], [0, 0, 1, 1], [], []>} : vector<16x128xf32>, vector<128x128xf32>, vector<16x128xf32> -> vector<16x128xf32>
    %94 = arith.addf %91, %93 : vector<16x128xf32>
    %95 = vector.broadcast %12 : vector<1x128xf32> to vector<16x128xf32>
    %96 = arith.addf %94, %95 : vector<16x128xf32>
    %97 = vector.broadcast %4 : vector<16x1xf32> to vector<16x128xf32>
    %98 = arith.mulf %97, %96 : vector<16x128xf32>
    %cst_30 = arith.constant 0.000000e+00 : f32
    %99 = vector.broadcast %cst_30 : f32 to vector<16x128xf32>
    %100 = arith.maximumf %98, %99 : vector<16x128xf32>
    %101 = arith.mulf %100, %82 : vector<16x128xf32>
    %cst_31 = arith.constant 1.000000e+00 : f32
    %102 = vector.broadcast %cst_31 : f32 to vector<16x128xf32>
    %103 = arith.subf %102, %82 : vector<16x128xf32>
    %104 = arith.mulf %19, %103 : vector<16x128xf32>
    %105 = arith.addf %101, %104 : vector<16x128xf32>
    %106 = vector.shape_cast %105 : vector<16x128xf32> to vector<2x8x128xf32>
    %107 = vector.extract_strided_slice %2 {offsets = [0, 0, 0], sizes = [2, 8, 1], strides = [1, 1, 1]} : vector<2x8x8xf32> to vector<2x8x1xf32>
    %108 = vector.extract_strided_slice %106 {offsets = [0, 0, 0], sizes = [2, 1, 128], strides = [1, 1, 1]} : vector<2x8x128xf32> to vector<2x1x128xf32>
    %109 = vector.broadcast %107 : vector<2x8x1xf32> to vector<2x8x128xf32>
    %110 = vector.broadcast %108 : vector<2x1x128xf32> to vector<2x8x128xf32>
    %111 = arith.mulf %109, %110 : vector<2x8x128xf32>
    %112 = vector.extract_strided_slice %2 {offsets = [0, 0, 1], sizes = [2, 8, 1], strides = [1, 1, 1]} : vector<2x8x8xf32> to vector<2x8x1xf32>
    %113 = vector.extract_strided_slice %106 {offsets = [0, 1, 0], sizes = [2, 1, 128], strides = [1, 1, 1]} : vector<2x8x128xf32> to vector<2x1x128xf32>
    %114 = vector.broadcast %112 : vector<2x8x1xf32> to vector<2x8x128xf32>
    %115 = vector.broadcast %113 : vector<2x1x128xf32> to vector<2x8x128xf32>
    %116 = arith.mulf %114, %115 : vector<2x8x128xf32>
    %117 = arith.addf %111, %116 : vector<2x8x128xf32>
    %118 = vector.extract_strided_slice %2 {offsets = [0, 0, 2], sizes = [2, 8, 1], strides = [1, 1, 1]} : vector<2x8x8xf32> to vector<2x8x1xf32>
    %119 = vector.extract_strided_slice %106 {offsets = [0, 2, 0], sizes = [2, 1, 128], strides = [1, 1, 1]} : vector<2x8x128xf32> to vector<2x1x128xf32>
    %120 = vector.broadcast %118 : vector<2x8x1xf32> to vector<2x8x128xf32>
    %121 = vector.broadcast %119 : vector<2x1x128xf32> to vector<2x8x128xf32>
    %122 = arith.mulf %120, %121 : vector<2x8x128xf32>
    %123 = arith.addf %117, %122 : vector<2x8x128xf32>
    %124 = vector.extract_strided_slice %2 {offsets = [0, 0, 3], sizes = [2, 8, 1], strides = [1, 1, 1]} : vector<2x8x8xf32> to vector<2x8x1xf32>
    %125 = vector.extract_strided_slice %106 {offsets = [0, 3, 0], sizes = [2, 1, 128], strides = [1, 1, 1]} : vector<2x8x128xf32> to vector<2x1x128xf32>
    %126 = vector.broadcast %124 : vector<2x8x1xf32> to vector<2x8x128xf32>
    %127 = vector.broadcast %125 : vector<2x1x128xf32> to vector<2x8x128xf32>
    %128 = arith.mulf %126, %127 : vector<2x8x128xf32>
    %129 = arith.addf %123, %128 : vector<2x8x128xf32>
    %130 = vector.extract_strided_slice %2 {offsets = [0, 0, 4], sizes = [2, 8, 1], strides = [1, 1, 1]} : vector<2x8x8xf32> to vector<2x8x1xf32>
    %131 = vector.extract_strided_slice %106 {offsets = [0, 4, 0], sizes = [2, 1, 128], strides = [1, 1, 1]} : vector<2x8x128xf32> to vector<2x1x128xf32>
    %132 = vector.broadcast %130 : vector<2x8x1xf32> to vector<2x8x128xf32>
    %133 = vector.broadcast %131 : vector<2x1x128xf32> to vector<2x8x128xf32>
    %134 = arith.mulf %132, %133 : vector<2x8x128xf32>
    %135 = arith.addf %129, %134 : vector<2x8x128xf32>
    %136 = vector.extract_strided_slice %2 {offsets = [0, 0, 5], sizes = [2, 8, 1], strides = [1, 1, 1]} : vector<2x8x8xf32> to vector<2x8x1xf32>
    %137 = vector.extract_strided_slice %106 {offsets = [0, 5, 0], sizes = [2, 1, 128], strides = [1, 1, 1]} : vector<2x8x128xf32> to vector<2x1x128xf32>
    %138 = vector.broadcast %136 : vector<2x8x1xf32> to vector<2x8x128xf32>
    %139 = vector.broadcast %137 : vector<2x1x128xf32> to vector<2x8x128xf32>
    %140 = arith.mulf %138, %139 : vector<2x8x128xf32>
    %141 = arith.addf %135, %140 : vector<2x8x128xf32>
    %142 = vector.extract_strided_slice %2 {offsets = [0, 0, 6], sizes = [2, 8, 1], strides = [1, 1, 1]} : vector<2x8x8xf32> to vector<2x8x1xf32>
    %143 = vector.extract_strided_slice %106 {offsets = [0, 6, 0], sizes = [2, 1, 128], strides = [1, 1, 1]} : vector<2x8x128xf32> to vector<2x1x128xf32>
    %144 = vector.broadcast %142 : vector<2x8x1xf32> to vector<2x8x128xf32>
    %145 = vector.broadcast %143 : vector<2x1x128xf32> to vector<2x8x128xf32>
    %146 = arith.mulf %144, %145 : vector<2x8x128xf32>
    %147 = arith.addf %141, %146 : vector<2x8x128xf32>
    %148 = vector.extract_strided_slice %2 {offsets = [0, 0, 7], sizes = [2, 8, 1], strides = [1, 1, 1]} : vector<2x8x8xf32> to vector<2x8x1xf32>
    %149 = vector.extract_strided_slice %106 {offsets = [0, 7, 0], sizes = [2, 1, 128], strides = [1, 1, 1]} : vector<2x8x128xf32> to vector<2x1x128xf32>
    %150 = vector.broadcast %148 : vector<2x8x1xf32> to vector<2x8x128xf32>
    %151 = vector.broadcast %149 : vector<2x1x128xf32> to vector<2x8x128xf32>
    %152 = arith.mulf %150, %151 : vector<2x8x128xf32>
    %153 = arith.addf %147, %152 : vector<2x8x128xf32>
    %154 = vector.shape_cast %153 : vector<2x8x128xf32> to vector<16x128xf32>
    %cst_32 = arith.constant dense<0.000000e+00> : vector<16x384xf32>
    %155 = tpu.matmul %154, %6, %cst_32 {dimension_numbers = #tpu.dot_dimension_numbers<[1], [0], [0], [1], [0, 0, 1, 1], [], []>} : vector<16x128xf32>, vector<128x384xf32>, vector<16x384xf32> -> vector<16x384xf32>
    %156 = vector.broadcast %10 : vector<1x384xf32> to vector<16x384xf32>
    %157 = arith.addf %155, %156 : vector<16x384xf32>
    %cst_33 = arith.constant dense<0.000000e+00> : vector<16x256xf32>
    %158 = tpu.matmul %105, %7, %cst_33 {dimension_numbers = #tpu.dot_dimension_numbers<[1], [0], [0], [1], [0, 0, 1, 1], [], []>} : vector<16x128xf32>, vector<128x256xf32>, vector<16x256xf32> -> vector<16x256xf32>
    %159 = vector.broadcast %11 : vector<1x256xf32> to vector<16x256xf32>
    %160 = arith.addf %158, %159 : vector<16x256xf32>
    %161 = vector.extract_strided_slice %157 {offsets = [0, 0], sizes = [16, 128], strides = [1, 1]} : vector<16x384xf32> to vector<16x128xf32>
    %162 = vector.extract_strided_slice %160 {offsets = [0, 0], sizes = [16, 128], strides = [1, 1]} : vector<16x256xf32> to vector<16x128xf32>
    %163 = arith.addf %161, %162 : vector<16x128xf32>
    %164 = arith.negf %163 : vector<16x128xf32>
    %165 = math.exp %164 : vector<16x128xf32>
    %cst_34 = arith.constant 1.000000e+00 : f32
    %166 = vector.broadcast %cst_34 : f32 to vector<16x128xf32>
    %167 = arith.addf %166, %165 : vector<16x128xf32>
    %168 = arith.divf %166, %167 : vector<16x128xf32>
    %169 = vector.extract_strided_slice %157 {offsets = [0, 128], sizes = [16, 128], strides = [1, 1]} : vector<16x384xf32> to vector<16x128xf32>
    %170 = vector.extract_strided_slice %160 {offsets = [0, 128], sizes = [16, 128], strides = [1, 1]} : vector<16x256xf32> to vector<16x128xf32>
    %171 = arith.addf %169, %170 : vector<16x128xf32>
    %172 = arith.negf %171 : vector<16x128xf32>
    %173 = math.exp %172 : vector<16x128xf32>
    %cst_35 = arith.constant 1.000000e+00 : f32
    %174 = vector.broadcast %cst_35 : f32 to vector<16x128xf32>
    %175 = arith.addf %174, %173 : vector<16x128xf32>
    %176 = arith.divf %174, %175 : vector<16x128xf32>
    %177 = vector.extract_strided_slice %157 {offsets = [0, 256], sizes = [16, 128], strides = [1, 1]} : vector<16x384xf32> to vector<16x128xf32>
    %178 = arith.mulf %176, %105 : vector<16x128xf32>
    %cst_36 = arith.constant dense<0.000000e+00> : vector<16x128xf32>
    %179 = tpu.matmul %178, %8, %cst_36 {dimension_numbers = #tpu.dot_dimension_numbers<[1], [0], [0], [1], [0, 0, 1, 1], [], []>} : vector<16x128xf32>, vector<128x128xf32>, vector<16x128xf32> -> vector<16x128xf32>
    %180 = arith.addf %177, %179 : vector<16x128xf32>
    %181 = vector.broadcast %12 : vector<1x128xf32> to vector<16x128xf32>
    %182 = arith.addf %180, %181 : vector<16x128xf32>
    %183 = vector.broadcast %4 : vector<16x1xf32> to vector<16x128xf32>
    %184 = arith.mulf %183, %182 : vector<16x128xf32>
    %cst_37 = arith.constant 0.000000e+00 : f32
    %185 = vector.broadcast %cst_37 : f32 to vector<16x128xf32>
    %186 = arith.maximumf %184, %185 : vector<16x128xf32>
    %187 = arith.mulf %186, %168 : vector<16x128xf32>
    %cst_38 = arith.constant 1.000000e+00 : f32
    %188 = vector.broadcast %cst_38 : f32 to vector<16x128xf32>
    %189 = arith.subf %188, %168 : vector<16x128xf32>
    %190 = arith.mulf %105, %189 : vector<16x128xf32>
    %191 = arith.addf %187, %190 : vector<16x128xf32>
    %192 = vector.shape_cast %191 : vector<16x128xf32> to vector<2x8x128xf32>
    %c0_39 = arith.constant 0 : index
    %c0_40 = arith.constant 0 : index
    %c0_41 = arith.constant 0 : index
    %193 = vector.load %arg12[%c0_39, %c0_40, %c0_41] : memref<2x8x128xf32, #tpu.memory_space<vmem>>, vector<2x8x128xf32>
    tpu.vector_store %arg12[%c0_39, %c0_40, %c0_41], %192 {strides = array<i32>} : memref<2x8x128xf32, #tpu.memory_space<vmem>>, vector<2x8x128xf32>,
    return
  }
  func.func @transform_0(%arg0: i32) -> (i32, i32, i32) {
    %c0_i32 = arith.constant 0 : i32
    %c0_i32_0 = arith.constant 0 : i32
    %c0_i32_1 = arith.constant 0 : i32
    return %arg0, %c0_i32, %c0_i32_0 : i32, i32, i32
  }
  func.func @transform_1(%arg0: i32) -> (i32, i32, i32) {
    %c0_i32 = arith.constant 0 : i32
    %c0_i32_0 = arith.constant 0 : i32
    %c0_i32_1 = arith.constant 0 : i32
    return %arg0, %c0_i32, %c0_i32_0 : i32, i32, i32
  }
  func.func @transform_2(%arg0: i32) -> (i32, i32, i32) {
    %c0_i32 = arith.constant 0 : i32
    %c0_i32_0 = arith.constant 0 : i32
    %c0_i32_1 = arith.constant 0 : i32
    return %arg0, %c0_i32, %c0_i32_0 : i32, i32, i32
  }
  func.func @transform_3(%arg0: i32) -> (i32, i32) {
    %c0_i32 = arith.constant 0 : i32
    %c0_i32_0 = arith.constant 0 : i32
    %c0_i32_1 = arith.constant 0 : i32
    return %c0_i32, %c0_i32_0 : i32, i32
  }
  func.func @transform_4(%arg0: i32) -> (i32, i32) {
    %c0_i32 = arith.constant 0 : i32
    %c0_i32_0 = arith.constant 0 : i32
    %c0_i32_1 = arith.constant 0 : i32
    return %c0_i32, %c0_i32_0 : i32, i32
  }
  func.func @transform_5(%arg0: i32) -> (i32, i32) {
    %c0_i32 = arith.constant 0 : i32
    %c0_i32_0 = arith.constant 0 : i32
    %c0_i32_1 = arith.constant 0 : i32
    return %c0_i32, %c0_i32_0 : i32, i32
  }
  func.func @transform_6(%arg0: i32) -> (i32, i32) {
    %c0_i32 = arith.constant 0 : i32
    %c0_i32_0 = arith.constant 0 : i32
    %c0_i32_1 = arith.constant 0 : i32
    return %c0_i32, %c0_i32_0 : i32, i32
  }
  func.func @transform_7(%arg0: i32) -> (i32, i32) {
    %c0_i32 = arith.constant 0 : i32
    %c0_i32_0 = arith.constant 0 : i32
    %c0_i32_1 = arith.constant 0 : i32
    return %c0_i32, %c0_i32_0 : i32, i32
  }
  func.func @transform_8(%arg0: i32) -> (i32, i32) {
    %c0_i32 = arith.constant 0 : i32
    %c0_i32_0 = arith.constant 0 : i32
    %c0_i32_1 = arith.constant 0 : i32
    return %c0_i32, %c0_i32_0 : i32, i32
  }
  func.func @transform_9(%arg0: i32) -> (i32, i32) {
    %c0_i32 = arith.constant 0 : i32
    %c0_i32_0 = arith.constant 0 : i32
    %c0_i32_1 = arith.constant 0 : i32
    return %c0_i32, %c0_i32_0 : i32, i32
  }
  func.func @transform_10(%arg0: i32) -> (i32, i32) {
    %c0_i32 = arith.constant 0 : i32
    %c0_i32_0 = arith.constant 0 : i32
    %c0_i32_1 = arith.constant 0 : i32
    return %c0_i32, %c0_i32_0 : i32, i32
  }
  func.func @transform_11(%arg0: i32) -> (i32, i32, i32) {
    %c0_i32 = arith.constant 0 : i32
    %c0_i32_0 = arith.constant 0 : i32
    %c0_i32_1 = arith.constant 0 : i32
    return %arg0, %c0_i32, %c0_i32_0 : i32, i32, i32
  }
}

</mosaic_0001>

<bundles_post_ra>
// kernel: tpu_custom_call.1
= control target key start
LH: loop header
LB: loop body
LE: loop exit
PB: predicated region body
PF: predicated region fallthrough
CT: control target
= control target key end

     0   :  { %s3618_s0 = inlined_call_operand.vmem [shape: f32[4,8,16], index: 0, kind: input, shape index: {}]   ;;  %s3619_s1 = inlined_call_operand.hbm [shape: f32[4,8,8], index: 1, kind: input, shape index: {}]   ;;  %s3620_s2 = inlined_call_operand.vmem [shape: f32[4,8,1], index: 2, kind: input, shape index: {}]   ;;  %s3621_s3 = inlined_call_operand.hbm [shape: f32[16,128], index: 3, kind: input, shape index: {}]   ;;  %s3622_s4 = inlined_call_operand.hbm [shape: f32[128,384], index: 4, kind: input, shape index: {}]   ;;  %s3623_s5 = inlined_call_operand.hbm [shape: f32[128,256], index: 5, kind: input, shape index: {}]   ;;  %s3624_s6 = inlined_call_operand.hbm [shape: f32[128,128], index: 6, kind: input, shape index: {}]   ;;  %s3625_s7 = inlined_call_operand.vmem [shape: f32[1,128], index: 7, kind: input, shape index: {}]   ;;  %s3626_s8 = inlined_call_operand.vmem [shape: f32[1,384], index: 8, kind: input, shape index: {}]   ;;  %s3627_s9 = inlined_call_operand.vmem [shape: f32[1,256], index: 9, kind: input, shape index: {}]   ;;  %s3628_s10 = inlined_call_operand.vmem [shape: f32[1,128], index: 10, kind: input, shape index: {}]   ;;  %s3629_s11 = inlined_call_operand.hbm [shape: f32[4,8,128], index: 11, kind: output, shape index: {}]  }
   0x1   :  { %3658 = sst [smem:[#allocation32_spill]] %s3621_s3 }
   0x2   :  { %3659 = sst [smem:[#allocation33_spill]] %s3628_s10 }
   0x3   :  { %3660 = sst [smem:[#allocation34_spill]] %s3629_s11 }
   0x4   :  { %16 = vsyncpa [#allocation3], 0 }
   0x5   :  { %18 = vsyncpa [#allocation3 + $0x1], 0 }
   0x6   :  { %19 = vsyncpa [#allocation6], 0 }
   0x7   :  { %20 = vsyncpa [#allocation9], 0 }
   0x8   :  { %21 = vsyncpa [#allocation4], 0 }
   0x9   :  { %23 = vsyncpa [#allocation4 + $0x1], 0  ;;  %s2867_s17 = smov 0   ;;  %s2869_s18 = smov 0  }
   0xa   :  { %s2871_s19 = smov 0   ;;  %s2873_s20 = smov 0  }
   0xb LB: > { %3661 = sst [smem:[#allocation16_spill]] %s2770_s17  ;;  %s2888_s21 = sadd.s32 4294967295, %s2782_s20   ;;  %s2782_s20 = sphi %s2873_s20, %s3718_s20   ;;  %s2778_s19 = sphi %s2871_s19, %s3717_s19   ;;  %s2774_s18 = sphi %s2869_s18, %s3716_s18   ;;  %s2770_s17 = sphi %s2867_s17, %s3715_s17  }
   0xc   : > { %s1857_s22 = sadd.s32 4294967294, %s2782_s20   ;;  %p75_p0 = scmp.ne.s32.totalorder %s2774_s18, %s2770_s17 }
   0xd   : > { %p3630_p1 = scmp.eq.s32.totalorder %s2888_s21, 0  ;;  %p299_p3 = scmp.eq.s32.totalorder %s1857_s22, 1 }
   0xe   : > { %p1858_p5 = scmp.ge.s32.totalorder %s2782_s20, 1  ;;  %p306_p7 = scmp.lt.s32.totalorder %s2782_s20, 3 }
   0xf   : > { %p2897_p4 = por %p3630_p1, %p75_p0  ;;  %p2902_p6 = por %p299_p3, %p75_p0 }
  0x10   : > { %p2907_p8 = pnand %p1858_p5, %p306_p7  ;;  %s2784_s26 = smov [#allocation5]  }
  0x11   : > { %s3662_s23 = scalar_select %p2897_p4, 1, 0 }
  0x12   : > { %s3663_s24 = scalar_select %p2902_p6, 1, 0 }
  0x13   : > { %s3665_s25 = scalar_select %p2907_p8, 1, 0 }
  0x14   : > { %3664 = sst [smem:[#allocation17_spill]] %s3663_s24  ;;  %s318_s27 = sshll.u32 %s2784_s26, 4  ;;  %s2911_s27 = int_to_ptr.vmem [resolvable:$true] %s318_s27 }
  0x15   : > { %p2432_p9 = pneg %p2907_p8  ;;  %s2785_s29 = smov [#allocation8]  }
  0x16   : > { %s344_s30 = sshll.u32 %s2785_s29, 4  ;;  %s3667_s3 = sld [smem:[#allocation32_spill]]  ;;  %s2922_s30 = int_to_ptr.vmem [resolvable:$true] %s344_s30 }
  0x17   : > { %p2918_p11 = pnand %p2432_p9, %p3630_p1 }
  0x19   : > { %p2932_p13 = pneg %p2918_p11 }
  0x1c   : > { %s2566_s14 = scalar_lea.hbm %s3667_s3, 256 }
  0x1d   : > { %p2567_p12 = scmp.ne.s32.totalorder %s3667_s3, %s2566_s14  ;;  %p2573_p5 = scmp.lt.u32.totalorder %s2566_s14, %s3667_s3 }
  0x1f   : > { %p2569_p0 = pnand %p2932_p13, %p2567_p12 }
  0x21   : > { %p2570_p3 = pneg %p2569_p0 }
  0x23   : > { %p2575_p7 = pnand %p2573_p5, %p2570_p3 }
  0x25   : > { %2578 = shalt.err (!%p2575_p7)
}
  0x26   : > { %s2579_s12 = scalar_lea.vmem %s2911_s27, 256  ;;  %p2587_p2 = scmp.lt.s32.totalorder %s2911_s27, %s2911_s27 }
  0x27   : > { %p2580_p9 = scmp.ne.s32.totalorder %s2911_s27, %s2579_s12  ;;  %p2588_p6 = scmp.lt.s32.totalorder %s2579_s12, %s2579_s12 }
  0x29   : > { %p2582_p10 = pnand %p2580_p9, %p2932_p13  ;;  %p2589_p12 = por %p2588_p6, %p2587_p2 }
  0x2b   : > { %p2583_p1 = pneg %p2582_p10 }
  0x2d   : > { %p2590_p0 = pnand %p2589_p12, %p2583_p1 }
  0x2f   : > { %2593 = shalt.err (!%p2590_p0)
}
  0x30   : > { %s3634_s13 = smov 128   ;;  %s3636_s14 = smov 8  }
  0x31   : > { %2435 = dma.hbm_to_vmem [thread:$0]  (!%p2918_p11), %s3667_s3, 256, %s2911_s27, [#allocation6], %s3634_s13, %s3634_s13, %s3636_s14  }
  0x32   : > { %s2594_s12 = scalar_lea.hbm %s3623_s5, 4096 }
  0x33   : > { %p2595_p1 = scmp.ne.s32.totalorder %s3623_s5, %s2594_s12  ;;  %p2601_p10 = scmp.lt.u32.totalorder %s2594_s12, %s3623_s5 }
  0x35   : > { %p2597_p2 = pnand %p2595_p1, %p2932_p13 }
  0x37   : > { %p2598_p6 = pneg %p2597_p2 }
  0x39   : > { %p2603_p3 = pnand %p2601_p10, %p2598_p6 }
  0x3b   : > { %2606 = shalt.err (!%p2603_p3)
}
  0x3c   : > { %s2607_s27 = scalar_lea.vmem %s2922_s30, 4096  ;;  %p2615_p12 = scmp.lt.s32.totalorder %s2922_s30, %s2922_s30 }
  0x3d   : > { %p2608_p5 = scmp.ne.s32.totalorder %s2922_s30, %s2607_s27  ;;  %p2616_p0 = scmp.lt.s32.totalorder %s2607_s27, %s2607_s27 }
  0x3f   : > { %p2610_p7 = pnand %p2608_p5, %p2932_p13  ;;  %p2617_p1 = por %p2616_p0, %p2615_p12 }
  0x41   : > { %p2611_p9 = pneg %p2610_p7 }
  0x43   : > { %p2618_p2 = pnand %p2617_p1, %p2611_p9 }
  0x45   : > { %2621 = shalt.err (!%p2618_p2)
}
  0x46   : > { %s2788_s17 = smov 256   ;;  %s2789_s10 = smov 16  }
  0x47   : > { %2441 = dma.hbm_to_vmem [thread:$0]  (!%p2918_p11), %s3623_s5, 4096, %s2922_s30, [#allocation9], %s2788_s17, %s2788_s17, %s2789_s10  }
  0x48   : > { %s2790_s15 = smov [#allocation7]   ;;  %s2622_s12 = scalar_lea.hbm %s3622_s4, 6144 }
  0x49   : > { %s331_s16 = sshll.u32 %s2790_s15, 4  ;;  %p2623_p6 = scmp.ne.s32.totalorder %s3622_s4, %s2622_s12  ;;  %s332_s16 = int_to_ptr.vmem [resolvable:$true] %s331_s16 }
  0x4a   : > { %p2629_p5 = scmp.lt.u32.totalorder %s2622_s12, %s3622_s4 }
  0x4b   : > { %p2625_p10 = pnand %p2623_p6, %p2932_p13 }
  0x4d   : > { %p2626_p3 = pneg %p2625_p10 }
  0x4f   : > { %p2631_p7 = pnand %p2629_p5, %p2626_p3 }
  0x51   : > { %2634 = shalt.err (!%p2631_p7)
}
  0x52   : > { %s2635_s30 = scalar_lea.vmem %s332_s16, 6144  ;;  %p2643_p1 = scmp.lt.s32.totalorder %s332_s16, %s332_s16 }
  0x53   : > { %p2636_p9 = scmp.ne.s32.totalorder %s332_s16, %s2635_s30  ;;  %p2644_p2 = scmp.lt.s32.totalorder %s2635_s30, %s2635_s30 }
  0x55   : > { %p2638_p12 = pnand %p2636_p9, %p2932_p13  ;;  %p2645_p4 = por %p2644_p2, %p2643_p1 }
  0x57   : > { %p2639_p0 = pneg %p2638_p12 }
  0x59   : > { %p2646_p8 = pnand %p2645_p4, %p2639_p0 }
  0x5b   : > { %2649 = shalt.err (!%p2646_p8)
}
  0x5c   : > { %s2791_s13 = smov 384   ;;  %s2792_s17 = smov 24  }
  0x5d   : > { %2438 = dma.hbm_to_vmem [thread:$0]  (!%p2918_p11), %s3622_s4, 6144, %s332_s16, [#allocation6], %s2791_s13, %s2791_s13, %s2792_s17  }
  0x5e   : > { %s2793_s10 = smov [#allocation10]   ;;  %s2650_s26 = scalar_lea.hbm %s3624_s6, 2048 }
  0x5f   : > { %s357_s11 = sshll.u32 %s2793_s10, 4  ;;  %p2651_p4 = scmp.ne.s32.totalorder %s3624_s6, %s2650_s26  ;;  %s358_s11 = int_to_ptr.vmem [resolvable:$true] %s357_s11 }
  0x60   : > { %p2657_p10 = scmp.lt.u32.totalorder %s2650_s26, %s3624_s6 }
  0x61   : > { %p2653_p8 = pnand %p2651_p4, %p2932_p13 }
  0x63   : > { %p2654_p6 = pneg %p2653_p8 }
  0x65   : > { %p2659_p3 = pnand %p2657_p10, %p2654_p6 }
  0x67   : > { %2662 = shalt.err (!%p2659_p3)
}
  0x68   : > { %s2663_s16 = scalar_lea.vmem %s358_s11, 2048  ;;  %p2671_p12 = scmp.lt.s32.totalorder %s358_s11, %s358_s11 }
  0x69   : > { %p2664_p5 = scmp.ne.s32.totalorder %s358_s11, %s2663_s16  ;;  %p2672_p0 = scmp.lt.s32.totalorder %s2663_s16, %s2663_s16 }
  0x6b   : > { %p2666_p7 = pnand %p2664_p5, %p2932_p13  ;;  %p2673_p1 = por %p2672_p0, %p2671_p12 }
  0x6d   : > { %p2667_p9 = pneg %p2666_p7 }
  0x6f   : > { %p2674_p2 = pnand %p2673_p1, %p2667_p9 }
  0x71   : > { %2677 = shalt.err (!%p2674_p2)
}
  0x72   : > { %s3669_s13 = smov 8   ;;  %s3670_s17 = smov 128  }
  0x73   : > { %2444 = dma.hbm_to_vmem [thread:$0]  (!%p2918_p11), %s3624_s6, 2048, %s358_s11, [#allocation9], %s3670_s17, %s3670_s17, %s3669_s13  }
  0x74   : > { %s3019_s22 = sadd.s32 1, %s2782_s20   ;;  %s62_s28 = sadd.s32 1, %s2778_s19 }
  0x75   : > { %s59_s10 = ssub.s32 %s2782_s20, %s3019_s22  ;;  %p69_p13 = scmp.ne.s32.totalorder %s2778_s19, %s2774_s18 }
  0x76   : > { %p60_p4 = scmp.eq.s32.totalorder %s59_s10, 0  ;;  %p70_p8 = scmp.eq.s32.totalorder %s2782_s20, 0 }
  0x77   : > { %p3671_p6 = scmp.eq.s32.totalorder %s2888_s21, 1  ;;  %p2457_p3 = scmp.lt.s32.totalorder %s2782_s20, 2 }
  0x78   : > { %s3035_s15 = scalar_select %p60_p4, %s2778_s19, %s62_s28  }
  0x79   : > { %p3029_p10 = por %p3671_p6, %p69_p13  ;;  %p71_p5 = por %p70_p8, %p69_p13 }
  0x7a   : > { %s392_s26 = sand.u32 1, %s2778_s19   ;;  %s1895_s11 = sshll.u32 %s2782_s20, 8 }
  0x7b   : > { %s1864_s29 = sshll.u32 %s392_s26, 4  ;;  %s3042_s30 = scalar_lea.hbm %s3619_s1, %s1895_s11 }
  0x7c   : > { %s396_s16 = scalar_lea.vmem [#allocation2], %s1864_s29  ;;  %p3046_p11 = pnand %p2457_p3, %p71_p5 }
  0x7d   : > { %s403_s3 = sshll.u32 %s396_s16, 4  ;;  %s3050_s28 = scalar_lea.sflag [#allocation3], %s392_s26  ;;  %s3044_s3 = int_to_ptr.vmem [resolvable:$true] %s403_s3 }
  0x7e   : > { %s2678_s10 = scalar_lea.hbm %s3042_s30, 256  ;;  %p2680_p9 = pneg %p3046_p11 }
  0x7f   : > { %p2679_p7 = scmp.ne.s32.totalorder %s3042_s30, %s2678_s10  ;;  %s2683_s12 = scalar_lea.hbm %s3619_s1, 512 }
  0x80   : > { %p2684_p1 = scmp.lt.u32.totalorder %s3042_s30, %s3619_s1  ;;  %p2685_p2 = scmp.lt.u32.totalorder %s2683_s12, %s2678_s10 }
  0x81   : > { %p2681_p12 = pnand %p2680_p9, %p2679_p7  ;;  %p2687_p4 = scmp.lt.u32.totalorder %s2678_s10, %s3042_s30 }
  0x82   : > { %p2686_p13 = por %p2685_p2, %p2684_p1 }
  0x83   : > { %p2682_p0 = pneg %p2681_p12 }
  0x84   : > { %p2688_p8 = por %p2687_p4, %p2686_p13 }
  0x86   : > { %p2689_p6 = pnand %p2688_p8, %p2682_p0 }
  0x88   : > { %2692 = shalt.err (!%p2689_p6)
}
  0x89   : > { %s2693_s26 = scalar_lea.vmem %s3044_s3, 256  ;;  %s2794_s29 = smov [#allocation2]  }
  0x8a   : > { %p2694_p3 = scmp.ne.s32.totalorder %s3044_s3, %s2693_s26  ;;  %s2698_s11 = sshll.u32 %s2794_s29, 4  ;;  %s2699_s11 = int_to_ptr.vmem [resolvable:$false] %s2698_s11 }
  0x8b   : > { %s2700_s27 = scalar_lea.vmem %s2699_s11, 512  ;;  %p2701_p12 = scmp.lt.s32.totalorder %s3044_s3, %s2699_s11 }
  0x8c   : > { %p2696_p5 = pnand %p2694_p3, %p2680_p9  ;;  %p2702_p1 = scmp.lt.s32.totalorder %s2700_s27, %s2693_s26 }
  0x8e   : > { %p2697_p7 = pneg %p2696_p5  ;;  %p2703_p2 = por %p2702_p1, %p2701_p12 }
  0x90   : > { %p2704_p13 = pnand %p2703_p2, %p2697_p7 }
  0x92   : > { %2707 = shalt.err (!%p2704_p13)
}
  0x93   : > { %2448 = dma.hbm_to_vmem [thread:$0]  (!%p3046_p11), %s3042_s30, 256, %s3044_s3, %s3050_s28, %s3670_s17, %s3670_s17, %s3669_s13  }
  0x94   : > { %p3674_p9 = scmp.ne.s32.totalorder %s3665_s25, 0 }
  0x96   : > { %424 = sbr.rel (%p3674_p9) target bundleno = 1454 (0x5ae), region = 64 }
  0x9d   : > { %s3084_s10 = sand.u32 1, %s2774_s18   ;;  %p3675_p0 = scmp.ne.s32.totalorder %s3662_s23, 0 }
  0x9e   : > { %s1868_s12 = sshll.u32 %s3084_s10, 4  ;;  %s427_s16 = scalar_lea.sflag [#allocation3], %s3084_s10 }
  0x9f   : > { %s3090_s14 = scalar_lea.vmem [#allocation2], %s1868_s12 }
  0xa0   : > { %2753 = dma.done.wait (%p3675_p0), %s427_s16, 256  }
  0xa1   : > { %2755 = vsyncadd (%p3675_p0), %s427_s16, 4294967040  ;;  %p3676_p11 = scmp.eq.s32.totalorder %s2888_s21, 0 }
  0xa3   : > { %2757 = dma.done.wait (%p3676_p11), [#allocation6], 6400   ;;  %p3677_p4 = pmov %p3676_p11 }
  0xa5   : > { %2759 = vsyncadd (%p3677_p4), [#allocation6], 4294960896  ;;  %p3678_p8 = pmov %p3677_p4 }
  0xa6   : > { %p3679_p6 = pmov %p3677_p4 }
  0xa7   : > { %2761 = dma.done.wait (%p3678_p8), [#allocation9], 6144  }
  0xa8   : > { %2763 = vsyncadd (%p3679_p6), [#allocation9], 4294961152  ;;  %s1874_s25 = sshll.u32 %s2888_s21, 1  ;;  %v2795_v0 = vmov 1   ;;  %v2796_v1 = vmov 0   ;;  %vm623_vm0 = vcmask 130048  }
  0xa9   : > { %p496_p3 = scmp.lt.s32.totalorder %s1874_s25, 3  ;;  %2517 = vset.pattern.permute.xlu1 %v2795_v0  ;;  %2516 = vset.pattern.permute.xlu0 %v2796_v1  ;;  %v515_v2 = vld [vmem:[#allocation5] sm:$0xff]  ;;  %v516_v3 = vld [vmem:[#allocation5 + $0x8] sm:$0xff]  ;;  %v2797_v9 = vmov 2   ;;  %v2798_v10 = vmov 3   ;;  %v2799_v11 = vmov 4  }
  0xaa   : > { %v2120_v5 = vpack.c.bf16 %v516_v3, %v515_v2  ;;  %v511_v6 = vld [vmem:[%s3090_s14] sm:$0xff]  ;;  %v2800_v12 = vmov 6   ;;  %v2801_v13 = vmov 5   ;;  %v512_v14 = vld [vmem:[%s3090_s14 + $0x8] sm:$0xff]  ;;  %v2802_v15 = vmov 7   ;;  %s3695_s17 = sld [smem:[#allocation33_spill]] }
  0xab   : > { %s3720_s25 = smov (!%p496_p3, %s1874_s25), 3  ;;  %740 = vperm.xlu1 %2517, %v511_v6   ;;  %v518_v17 = vld [vmem:[#allocation7 + $0x8] sm:$0xff]  ;;  %v521_v18 = vld [vmem:[#allocation7 + $0x20] sm:$0xff]  ;;  %v520_v21 = vld [vmem:[#allocation7 + $0x18] sm:$0xff]  ;;  %s494_s3 = scalar_lea.vmem [#allocation11], %s1868_s12 }
  0xac   : > { %s1875_s23 = sshll.u32 %s3720_s25, 3  ;;  %2121 = vmatprep.subr.bf16.mxu0 %v2120_v5  ;;  %v517_v19 = vld [vmem:[#allocation7] sm:$0xff]  ;;  %v3119_v20 = vpack.c.bf16 %v521_v18, %v518_v17  ;;  %v519_v22 = vld [vmem:[#allocation7 + $0x10] sm:$0xff]  ;;  %v522_v23 = vld [vmem:[#allocation7 + $0x28] sm:$0xff]  ;;  %s1722_s28 = sshll.u32 %s494_s3, 4  ;;  %s3574_s28 = int_to_ptr.vmem [resolvable:$true] %s1722_s28 }
  0xad   : > { %s499_s30 = scalar_lea.vmem %s3618_s0, %s1875_s23  ;;  %s3111_s26 = scalar_lea.vmem %s3620_s2, %s1875_s23  ;;  %2123 = vmatpush3.bf16.msra.mxu0 %v2120_v5  ;;  %v3121_v24 = vpack.c.bf16 %v520_v21, %v517_v19  ;;  %v3123_v25 = vpack.c.bf16 %v522_v23, %v519_v22  ;;  %v524_v26 = vld [vmem:[#allocation7 + $0x38] sm:$0xff]  ;;  %v527_v27 = vld [vmem:[#allocation7 + $0x50] sm:$0xff]  ;;  %v526_v30 = vld [vmem:[#allocation7 + $0x48] sm:$0xff] }
  0xae   : > { %v509_v4 = vld [vmem:[%s499_s30] sm:$0xff]  ;;  %v510_v8 = vld [vmem:[%s499_s30 + $0x8] sm:$0xff]  ;;  %2125 = vmatprep.subr.bf16.mxu1 %v3119_v20  ;;  %v3129_v29 = vpack.c.bf16 %v527_v27, %v524_v26  ;;  %v525_v31 = vld [vmem:[#allocation7 + $0x40] sm:$0xff]  ;;  %s1896_s30 = sshll.u32 %s2888_s21, 8  ;;  %s3710_s11 = sld [smem:[#allocation34_spill]] }
  0xaf   : > { %1977 = vmatprep.mubr.msk.f32.mxu0 %vm623_vm0, %v509_v4  ;;  %v513_v7 = vld [vmem:[%s3111_s26] sm:$0xff]  ;;  %2518 = vset.pattern.permute.xlu1 %v2797_v9  ;;  %v514_v16 = vld [vmem:[%s3111_s26 + $0x8] sm:$0xff]  ;;  %v530_v35 = vld [vmem:[#allocation7 + $0x68] sm:$0xff]  ;;  %s1709_s21 = scalar_lea.sflag [#allocation4], %s3084_s10  ;;  %s2708_s12 = scalar_lea.vmem %s3574_s28, 256 }
  0xb0   : > { %709 = vperm.xlu0 %2516, %v513_v7   ;;  %1978 = vmatmul.mubr.msk.f32.vlgmr.msra.gmra.mrb[0].mxu0 %vm623_vm0, %v510_v8  ;;  %v523_v28 = vld [vmem:[#allocation7 + $0x30] sm:$0xff]  ;;  %v528_v32 = vld [vmem:[#allocation7 + $0x58] sm:$0xff]  ;;  %v533_v36 = vld [vmem:[#allocation7 + $0x80] sm:$0xff]  ;;  %p2709_p5 = scmp.ne.s32.totalorder %s3574_s28, %s2708_s12  ;;  %s2804_s16 = smov [#allocation11]  }
  0xb1   : > { %760 = vperm.xlu1 %2518, %v511_v6   ;;  %2127 = vmatpush1.bf16.msra.mxu1 %v3121_v24  ;;  %v3131_v33 = vpack.c.bf16 %v526_v30, %v523_v28  ;;  %v3133_v34 = vpack.c.bf16 %v528_v32, %v525_v31  ;;  %v3139_v37 = vpack.c.bf16 %v533_v36, %v530_v35  ;;  %v529_v38 = vld [vmem:[#allocation7 + $0x60] sm:$0xff]  ;;  %v532_v39 = vld [vmem:[#allocation7 + $0x78] sm:$0xff]  ;;  %v531_v41 = vld [vmem:[#allocation7 + $0x70] sm:$0xff]  ;;  %v3640_v32 = vmov 0.0   ;;  %s2712_s14 = sshll.u32 %s2804_s16, 4  ;;  %s2713_s14 = int_to_ptr.vmem [resolvable:$false] %s2712_s14 }
  0xb2   : > { %2157 = vmatprep.subr.bf16.mxu0 %v3123_v25  ;;  %2129 = vmatprep.subr.bf16.mxu1 %v3129_v29  ;;  %v3141_v40 = vpack.c.bf16 %v532_v39, %v529_v38  ;;  %v534_v42 = vld [vmem:[#allocation7 + $0x88] sm:$0xff]  ;;  %v536_v44 = vld [vmem:[#allocation7 + $0x98] sm:$0xff]  ;;  %v539_v45 = vld [vmem:[#allocation7 + $0xb0] sm:$0xff]  ;;  %p2710_p7 = pnand %p2709_p5, %p3029_p10  ;;  %s2714_s25 = scalar_lea.vmem %s2713_s14, 512 }
  0xb3   : > { %2159 = vmatpush3.bf16.msra.mxu0 %v3123_v25  ;;  %v3144_v43 = vpack.c.bf16 %v534_v42, %v531_v41  ;;  %v3149_v46 = vpack.c.bf16 %v539_v45, %v536_v44  ;;  %v535_v47 = vld [vmem:[#allocation7 + $0x90] sm:$0xff]  ;;  %v538_v48 = vld [vmem:[#allocation7 + $0xa8] sm:$0xff]  ;;  %v537_v49 = vld [vmem:[#allocation7 + $0xa0] sm:$0xff]  ;;  %959 = vmatprep.mubr.f32.mxu1 %v3640_v32  ;;  %p2715_p1 = scmp.lt.s32.totalorder %s3574_s28, %s2713_s14  ;;  %p2716_p2 = scmp.lt.s32.totalorder %s2714_s25, %s2708_s12 }
  0xb4   : > { %721 = vperm.xlu0 %2516, %v511_v6   ;;  %2161 = vmatprep.subr.bf16.mxu0 %v3133_v34  ;;  %v540_v50 = vld [vmem:[#allocation7 + $0xb8] sm:$0xff]  ;;  %v3152_v51 = vpack.c.bf16 %v538_v48, %v535_v47  ;;  %v542_v53 = vld [vmem:[#allocation7 + $0xc8] sm:$0xff]  ;;  %v545_v54 = vld [vmem:[#allocation7 + $0xe0] sm:$0xff]  ;;  %v729_v48 = vlaneseq  ;;  %s3572_s27 = scalar_lea.hbm %s3710_s11, %s1896_s30  ;;  %p2711_p12 = pneg %p2710_p7 }
  0xb5   : > { %2520 = vset.pattern.permute.xlu1 %v2799_v11  ;;  %2131 = vmatpush1.bf16.msra.mxu1 %v3131_v33  ;;  %v3154_v52 = vpack.c.bf16 %v540_v50, %v537_v49  ;;  %v3158_v55 = vpack.c.bf16 %v545_v54, %v542_v53  ;;  %v541_v56 = vld [vmem:[#allocation7 + $0xc0] sm:$0xff]  ;;  %v544_v57 = vld [vmem:[#allocation7 + $0xd8] sm:$0xff]  ;;  %v543_v59 = vld [vmem:[#allocation7 + $0xd0] sm:$0xff]  ;;  %p2717_p13 = por %p2716_p2, %p2715_p1 }
  0xb6   : > { %800 = vperm.xlu1 %2520, %v511_v6   ;;  %2133 = vmatprep.subr.bf16.mxu1 %v3139_v37  ;;  %v3161_v58 = vpack.c.bf16 %v544_v57, %v541_v56  ;;  %v546_v60 = vld [vmem:[#allocation7 + $0xe8] sm:$0xff]  ;;  %v548_v62 = vld [vmem:[#allocation7 + $0xf8] sm:$0xff]  ;;  %v551_v63 = vld [vmem:[#allocation7 + $0x110] sm:$0xff]  ;;  %v730_v54 = vshrl.u32 %v729_v48, 7 }
  0xb7   : > { %2163 = vmatpush3.bf16.msra.mxu0 %v3133_v34  ;;  %v3164_v61 = vpack.c.bf16 %v546_v60, %v543_v59  ;;  %v550_v2 = vld [vmem:[#allocation7 + $0x108] sm:$0xff]  ;;  %v549_v4 = vld [vmem:[#allocation7 + $0x100] sm:$0xff]  ;;  %v552_v5 = vld [vmem:[#allocation7 + $0x118] sm:$0xff]  ;;  %p2718_p9 = pnand %p2717_p13, %p2711_p12 }
  0xb8   : > { %2519 = vset.pattern.permute.xlu0 %v2798_v10  ;;  %2165 = vmatprep.subr.bf16.mxu0 %v3144_v43  ;;  %v554_v7 = vld [vmem:[#allocation7 + $0x128] sm:$0xff]  ;;  %v557_v8 = vld [vmem:[#allocation7 + $0x140] sm:$0xff]  ;;  %v563_v17 = vld [vmem:[#allocation7 + $0x170] sm:$0xff]  ;;  %v3281_v32 = vsub.s32 6, %v730_v54 }
  0xb9   : > { %780 = vperm.xlu0 %2519, %v511_v6   ;;  %2135 = vmatpush1.bf16.msra.mxu1 %v3141_v40  ;;  %v559_v19 = vld [vmem:[#allocation7 + $0x150] sm:$0xff]  ;;  %v562_v21 = vld [vmem:[#allocation7 + $0x168] sm:$0xff]  ;;  %v561_v23 = vld [vmem:[#allocation7 + $0x160] sm:$0xff] }
  0xba   : > { %2521 = vset.pattern.permute.xlu1 %v2801_v13  ;;  %2137 = vmatprep.subr.bf16.mxu1 %v3149_v46  ;;  %v3191_v22 = vpack.c.bf16 %v562_v21, %v559_v19  ;;  %v564_v26 = vld [vmem:[#allocation7 + $0x178] sm:$0xff]  ;;  %v566_v28 = vld [vmem:[#allocation8 + $0x8] sm:$0xff]  ;;  %v1878_v49 = vld [vmem:[%s3625_s7] ss:$0 sm:$0xff]  ;;  %3687 = vst [vmem:[#allocation25_spill] sm:$0xff] %v3281_v32 }
  0xbb   : > { %820 = vperm.xlu1 %2521, %v511_v6   ;;  %2167 = vmatpush3.bf16.msra.mxu0 %v3144_v43  ;;  %v3194_v27 = vpack.c.bf16 %v564_v26, %v561_v23  ;;  %v568_v30 = vld [vmem:[#allocation8 + $0x18] sm:$0xff]  ;;  %v3258_v26 = vsub.s32 5, %v730_v54 }
  0xbc   : > { %2169 = vmatprep.subr.bf16.mxu0 %v3154_v52  ;;  %v3198_v31 = vpack.c.bf16 %v568_v30, %v566_v28 }
  0xbd   : > { %2522 = vset.pattern.permute.xlu0 %v2800_v12  ;;  %2139 = vmatpush1.bf16.msra.mxu1 %v3152_v51 }
  0xbe   : > { %840 = vperm.xlu0 %2522, %v511_v6   ;;  %2141 = vmatprep.subr.bf16.mxu1 %v3158_v55 }
  0xbf   : > { %2523 = vset.pattern.permute.xlu1 %v2802_v15  ;;  %2171 = vmatpush3.bf16.msra.mxu0 %v3154_v52 }
  0xc0   : > { %860 = vperm.xlu1 %2523, %v511_v6   ;;  %2173 = vmatprep.subr.bf16.mxu0 %v3164_v61  ;;  %v3174_v6 = vpack.c.bf16 %v552_v5, %v549_v4  ;;  %v3234_v5 = vsub.s32 3, %v730_v54 }
  0xc1   : > { %2143 = vmatpush1.bf16.msra.mxu1 %v3161_v58 }
  0xc2   : > { %2525 = vset.pattern.permute.xlu0 %v2796_v1 }
  0xc3   : > { %726 = vperm.xlu0 %2525, %v512_v14   ;;  %2175 = vmatpush3.bf16.msra.mxu0 %v3164_v61 }
  0xc4   : > { %2524 = vset.pattern.permute.xlu1 %v2796_v1  ;;  %v547_v1 = vld [vmem:[#allocation7 + $0xf0] sm:$0xff]  ;;  %2177 = vmatprep.subr.bf16.mxu0 %v3174_v6 }
  0xc5   : > { %714 = vperm.xlu1 %2524, %v514_v16   ;;  %v3171_v3 = vpack.c.bf16 %v550_v2, %v547_v1  ;;  %v560_v16 = vld [vmem:[#allocation7 + $0x158] sm:$0xff]  ;;  %v3230_v1 = vsub.s32 1, %v730_v54  ;;  %v3232_v2 = vsub.s32 2, %v730_v54 }
  0xc6   : > { %v3188_v18 = vpack.c.bf16 %v563_v17, %v560_v16 }
  0xc7   : > { %2528 = vset.pattern.permute.xlu0 %v2798_v10  ;;  %v553_v10 = vld [vmem:[#allocation7 + $0x120] sm:$0xff]  ;;  %2179 = vmatpush3.bf16.msra.mxu0 %v3174_v6 }
  0xc8   : > { %784 = vperm.xlu0 %2528, %v512_v14  }
  0xc9   : > { %2526 = vset.pattern.permute.xlu1 %v2795_v0  ;;  %v3168_v0 = vpack.c.bf16 %v551_v63, %v548_v62  ;;  %v3228_v63 = vsub.s32 0, %v730_v54 }
  0xca   : > { %744 = vperm.xlu1 %2526, %v512_v14  }
  0xcb   : > { %2145 = vmatprep.subr.bf16.mxu1 %v3168_v0 }
  0xcc   : > { %2531 = vset.pattern.permute.xlu0 %v2800_v12  ;;  %2147 = vmatpush1.bf16.msra.mxu1 %v3171_v3 }
  0xcd   : > { %844 = vperm.xlu0 %2531, %v512_v14  }
  0xce   : > { %2527 = vset.pattern.permute.xlu1 %v2797_v9  ;;  %v3178_v9 = vpack.c.bf16 %v557_v8, %v554_v7 }
  0xcf   : > { %764 = vperm.xlu1 %2527, %v512_v14  }
  0xd0   : > { %2149 = vmatprep.subr.bf16.mxu1 %v3178_v9 }
  0xd1   : > { %2533 = vset.pattern.permute.xlu0 %v2802_v15 }
  0xd3   : > { %2529 = vset.pattern.permute.xlu1 %v2799_v11  ;;  %v556_v11 = vld [vmem:[#allocation7 + $0x138] sm:$0xff] }
  0xd4   : > { %804 = vperm.xlu1 %2529, %v512_v14   ;;  %v3181_v12 = vpack.c.bf16 %v556_v11, %v553_v10  ;;  %v3243_v11 = vsub.s32 4, %v730_v54 }
  0xd6   : > { %2151 = vmatpush1.bf16.msra.mxu1 %v3181_v12 }
  0xd7   : > { %2153 = vmatprep.subr.bf16.mxu1 %v3188_v18 }
  0xd8   : > { %2530 = vset.pattern.permute.xlu1 %v2801_v13  ;;  %v555_v13 = vld [vmem:[#allocation7 + $0x130] sm:$0xff] }
  0xd9   : > { %824 = vperm.xlu1 %2530, %v512_v14  }
  0xda   : > { %2155 = vmatpush1.bf16.msra.mxu1 %v3191_v22 }
  0xdb   : > { %2189 = vmatprep.subr.bf16.mxu1 %v3198_v31 }
  0xdd   : > { %2532 = vset.pattern.permute.xlu1 %v2802_v15 }
  0xde   : > { %864 = vperm.xlu1 %2532, %v512_v14   ;;  %v558_v14 = vld [vmem:[#allocation7 + $0x148] sm:$0xff] }
  0xdf   : > { %v3184_v15 = vpack.c.bf16 %v558_v14, %v555_v13 }
  0xe1   : > { %2181 = vmatprep.subr.bf16.mxu0 %v3184_v15 }
  0xe2   : > { %2183 = vmatpush3.bf16.msra.mxu0 %v3184_v15 }
  0xe3   : > { %2185 = vmatprep.subr.bf16.mxu0 %v3194_v27 }
  0xe6   : > { %2187 = vmatpush3.bf16.msra.mxu0 %v3194_v27 }
 0x12a   : > { %v3203_v35 = vpop.permute.xlu1 %740 }
 0x12f   : > { %v3211_v41 = vpop.permute.xlu0 %709 }
 0x130   : > { %v3205_v36 = vpop.permute.xlu1 %760 }
 0x133   : > { %v3215_v44 = vpop.permute.xlu0 %721 }
 0x135   : > { %v3207_v38 = vpop.permute.xlu1 %800 }
 0x136   : > { %3680 = vst [vmem:[#allocation18_spill] sm:$0xff] %v3207_v38 }
 0x138   : > { %v3219_v47 = vpop.permute.xlu0 %780 }
 0x13a   : > { %v3209_v39 = vpop.permute.xlu1 %820 }
 0x13b   : > { %3681 = vst [vmem:[#allocation19_spill] sm:$0xff] %v3209_v39 }
 0x13d   : > { %v3226_v53 = vpop.permute.xlu0 %840 }
 0x13f   : > { %v3213_v42 = vpop.permute.xlu1 %860 }
 0x142   : > { %v3238_v8 = vpop.permute.xlu0 %726 }
 0x143   : > { %3684 = vst [vmem:[#allocation22_spill] sm:$0xff] %v3238_v8 }
 0x144   : > { %v3217_v45 = vpop.permute.xlu1 %714 }
 0x149   : > { %v3224_v50 = vpop.permute.xlu1 %744 }
 0x14a   : > { %3682 = vst [vmem:[#allocation20_spill] sm:$0xff] %v3224_v50 }
 0x14e   : > { %v3236_v7 = vpop.permute.xlu1 %764 }
 0x14f   : > { %3683 = vst [vmem:[#allocation21_spill] sm:$0xff] %v3236_v7 }
 0x153   : > { %v3263_v48 = vpop.permute.xlu1 %804 }
 0x154   : > { %3685 = vst [vmem:[#allocation23_spill] sm:$0xff] %v3263_v48 }
 0x183   : > { %v1979_v56 = vpop.f32.mrb[0].mxu0 }
 0x184   : > { %v702_v57 = vadd.f32 %v1979_v56, %v1878_v49  ;;  %v696_v59 = vpop.f32.mrb[1].mxu0 }
 0x185   : > { %v697_v60 = vadd.f32 %v1878_v49, %v696_v59  ;;  %v3265_v49 = vpop.permute.xlu0 %784 }
 0x186   : > { %v706_v62 = vmax.f32 %v702_v57, 0.0  ;;  %3686 = vst [vmem:[#allocation24_spill] sm:$0xff] %v3265_v49 }
 0x187   : > { %v705_v4 = vmax.f32 %v697_v60, 0.0 }
 0x188   : > { %v3241_v10 = vmul.f32 %v3217_v45, %v706_v62 }
 0x189   : > { %v3246_v13 = vmul.f32 %v3211_v41, %v705_v4 }
 0x18a   : > { %v736_v14 = vrot.slane %v3241_v10, %v3228_v63  ;;  %v754_v16 = vrot.slane %v3241_v10, %v3230_v1  ;;  %v774_v17 = vrot.slane %v3241_v10, %v3232_v2  ;;  %v794_v19 = vrot.slane %v3241_v10, %v3234_v5 }
 0x18b   : > { %v814_v30 = vrot.slane %v3241_v10, %v3243_v11  ;;  %v732_v57 = vrot.slane %v3246_v13, %v3228_v63  ;;  %v750_v59 = vrot.slane %v3246_v13, %v3230_v1  ;;  %v770_v60 = vrot.slane %v3246_v13, %v3232_v2 }
 0x18c   : > { %v738_v21 = vmul.f32 %v736_v14, %v3238_v8  ;;  %v756_v23 = vmul.f32 %v754_v16, %v3224_v50  ;;  %v776_v28 = vmul.f32 %v774_v17, %v3236_v7  ;;  %v796_v62 = vmul.f32 %v794_v19, %v3265_v49 }
 0x18d   : > { %v737_v14 = vmul.f32 %v732_v57, %v3215_v44  ;;  %v755_v16 = vmul.f32 %v750_v59, %v3203_v35  ;;  %v790_v17 = vrot.slane %v3246_v13, %v3234_v5  ;;  %v775_v8 = vmul.f32 %v770_v60, %v3205_v36  ;;  %v3296_v60 = vpop.permute.xlu0 %844 }
 0x18e   : > { %v758_v56 = vadd.f32 %v756_v23, %v738_v21  ;;  %v834_v21 = vrot.slane %v3241_v10, %v3258_v26  ;;  %v816_v23 = vmul.f32 %v814_v30, %v3263_v48  ;;  %v810_v19 = vrot.slane %v3246_v13, %v3243_v11  ;;  %3690 = vst [vmem:[#allocation28_spill] sm:$0xff] %v3296_v60 }
 0x18f   : > { %v757_v50 = vadd.f32 %v755_v16, %v737_v14  ;;  %v795_v49 = vmul.f32 %v790_v17, %v3219_v47  ;;  %v830_v30 = vrot.slane %v3246_v13, %v3258_v26  ;;  %v850_v14 = vrot.slane %v3246_v13, %v3281_v32 }
 0x190   : > { %v778_v4 = vadd.f32 %v776_v28, %v758_v56  ;;  %v3286_v28 = vsub.s32 7, %v730_v54  ;;  %v3288_v56 = vpop.permute.xlu1 %824  ;;  %v815_v54 = vmul.f32 %v810_v19, %v3207_v38 }
 0x191   : > { %3689 = vst [vmem:[#allocation27_spill] sm:$0xff] %v3288_v56  ;;  %v777_v59 = vadd.f32 %v775_v8, %v757_v50  ;;  %v836_v48 = vmul.f32 %v834_v21, %v3288_v56  ;;  %v835_v8 = vmul.f32 %v830_v30, %v3209_v39  ;;  %v855_v19 = vmul.f32 %v850_v14, %v3226_v53  ;;  %v567_v56 = vld [vmem:[#allocation8 + $0x10] sm:$0xff]  ;;  %v576_v14 = vld [vmem:[#allocation8 + $0x58] sm:$0xff] }
 0x192   : > { %v798_v7 = vadd.f32 %v796_v62, %v778_v4  ;;  %3688 = vst [vmem:[#allocation26_spill] sm:$0xff] %v3286_v28  ;;  %v854_v62 = vrot.slane %v3241_v10, %v3281_v32  ;;  %v870_v16 = vrot.slane %v3246_v13, %v3286_v28  ;;  %v874_v17 = vrot.slane %v3241_v10, %v3286_v28 }
 0x193   : > { %v797_v4 = vadd.f32 %v795_v49, %v777_v59  ;;  %v565_v59 = vld [vmem:[#allocation8] sm:$0xff] }
 0x194   : > { %v818_v57 = vadd.f32 %v816_v23, %v798_v7  ;;  %v856_v21 = vmul.f32 %v854_v62, %v3296_v60  ;;  %v3307_v23 = vpop.permute.xlu1 %864  ;;  %v875_v30 = vmul.f32 %v870_v16, %v3213_v42  ;;  %v3312_v39 = vpack.c.bf16 %v567_v56, %v565_v59  ;;  %v569_v62 = vld [vmem:[#allocation8 + $0x20] sm:$0xff]  ;;  %v571_v60 = vld [vmem:[#allocation8 + $0x30] sm:$0xff] }
 0x195   : > { %v817_v50 = vadd.f32 %v815_v54, %v797_v4  ;;  %v876_v54 = vmul.f32 %v874_v17, %v3307_v23  ;;  %v3691_v16 = vmov 0.0   ;;  %v573_v17 = vld [vmem:[#allocation8 + $0x40] sm:$0xff]  ;;  %v579_v59 = vld [vmem:[#allocation8 + $0x70] sm:$0xff] }
 0x196   : > { %v838_v7 = vadd.f32 %v836_v48, %v818_v57  ;;  %v570_v48 = vld [vmem:[#allocation8 + $0x28] sm:$0xff]  ;;  %v572_v57 = vld [vmem:[#allocation8 + $0x38] sm:$0xff] }
 0x197   : > { %v837_v49 = vadd.f32 %v835_v8, %v817_v50  ;;  %v3314_v38 = vpack.c.bf16 %v572_v57, %v570_v48  ;;  %v574_v8 = vld [vmem:[#allocation8 + $0x48] sm:$0xff]  ;;  %v584_v57 = vld [vmem:[#allocation8 + $0x98] sm:$0xff] }
 0x198   : > { %v858_v32 = vadd.f32 %v856_v21, %v838_v7  ;;  %v3317_v7 = vpack.c.bf16 %v571_v60, %v569_v62  ;;  %v3321_v56 = vpack.c.bf16 %v576_v14, %v574_v8  ;;  %v575_v21 = vld [vmem:[#allocation8 + $0x50] sm:$0xff]  ;;  %v577_v60 = vld [vmem:[#allocation8 + $0x60] sm:$0xff]  ;;  %v582_v48 = vld [vmem:[#allocation8 + $0x88] sm:$0xff] }
 0x199   : > { %v857_v4 = vadd.f32 %v855_v19, %v837_v49  ;;  %v578_v49 = vld [vmem:[#allocation8 + $0x68] sm:$0xff]  ;;  %v580_v19 = vld [vmem:[#allocation8 + $0x78] sm:$0xff]  ;;  %v583_v62 = vld [vmem:[#allocation8 + $0x90] sm:$0xff] }
 0x19a   : > { %v878_v50 = vadd.f32 %v876_v54, %v858_v32  ;;  %v3324_v32 = vpack.c.bf16 %v575_v21, %v573_v17  ;;  %v581_v54 = vld [vmem:[#allocation8 + $0x80] sm:$0xff]  ;;  %v588_v8 = vld [vmem:[#allocation8 + $0xb8] sm:$0xff] }
 0x19b   : > { %v877_v28 = vadd.f32 %v875_v30, %v857_v4  ;;  %v3331_v4 = vpack.c.bf16 %v579_v59, %v577_v60  ;;  %v3334_v30 = vpack.c.bf16 %v584_v57, %v582_v48  ;;  %v3337_v14 = vpack.c.bf16 %v583_v62, %v581_v54  ;;  %v585_v21 = vld [vmem:[#allocation8 + $0xa0] sm:$0xff]  ;;  %v592_v60 = vld [vmem:[#allocation8 + $0xd8] sm:$0xff]  ;;  %v594_v54 = vld [vmem:[#allocation8 + $0xe8] sm:$0xff] }
 0x19c   : > { %v589_v57 = vld [vmem:[#allocation8 + $0xc0] sm:$0xff]  ;;  %v596_v62 = vld [vmem:[#allocation8 + $0xf8] sm:$0xff] }
 0x19d   : > { %960 = vmatmul.mubr.f32.vlgmr.msra.gmra.mrb[0].mxu1 %v877_v28  ;;  %2012 = vmatprep.mubr.f32.mxu0 %v877_v28  ;;  %v3328_v28 = vpack.c.bf16 %v580_v19, %v578_v49  ;;  %3692 = vst [vmem:[#allocation29_spill] sm:$0xff] %v3331_v4  ;;  %3693 = vst [vmem:[#allocation30_spill] sm:$0xff] %v3334_v30  ;;  %v587_v49 = vld [vmem:[#allocation8 + $0xb0] sm:$0xff]  ;;  %v590_v19 = vld [vmem:[#allocation8 + $0xc8] sm:$0xff] }
 0x19e   : > { %2191 = vmatpush1.bf16.msra.mxu1 %v3312_v39  ;;  %2013 = vmatmul.mubr.f32.vlgmr.msra.gmra.mrb[2].mxu0 %v878_v50  ;;  %3694 = vst [vmem:[#allocation31_spill] sm:$0xff] %v3337_v14  ;;  %v3343_v59 = vpack.c.bf16 %v587_v49, %v585_v21  ;;  %v3346_v48 = vpack.c.bf16 %v592_v60, %v590_v19  ;;  %v611_v19 = vld [vmem:[#allocation10 + $0x70] sm:$0xff]  ;;  %v612_v60 = vld [vmem:[#allocation10 + $0x78] sm:$0xff] }
 0x19f   : > { %965 = vmatprep.mubr.f32.mxu1 %v3691_v16  ;;  %2193 = vmatprep.subr.bf16.mxu1 %v3314_v38 }
 0x1a1   : > { %966 = vmatmul.mubr.f32.gmra.mrb[2].mxu1 %v878_v50  ;;  %v586_v50 = vld [vmem:[#allocation8 + $0xa8] sm:$0xff] }
 0x1a2   : > { %2195 = vmatpush1.bf16.msra.mxu1 %v3317_v7  ;;  %1122 = vmatprep.mubr.f32.mxu1 %v3691_v16  ;;  %v3340_v17 = vpack.c.bf16 %v588_v8, %v586_v50  ;;  %v3352_v8 = vpack.c.bf16 %v596_v62, %v594_v54  ;;  %v614_v54 = vld [vmem:[%s3626_s8] sm:$0x7] }
 0x1a3   : > { %2197 = vmatprep.subr.bf16.mxu1 %v3321_v56  ;;  %v615_v62 = vld [vmem:[%s3627_s9] sm:$0x3] }
 0x1a6   : > { %2199 = vmatpush1.bf16.msra.mxu1 %v3324_v32 }
 0x1a7   : > { %2201 = vmatprep.subr.bf16.mxu1 %v3328_v28 }
 0x1aa   : > { %2203 = vmatpush1.bf16.msra.mxu1 %v3331_v4  ;;  %v591_v4 = vld [vmem:[#allocation8 + $0xd0] sm:$0xff] }
 0x1ab   : > { %2205 = vmatprep.subr.bf16.mxu1 %v3334_v30  ;;  %v3349_v50 = vpack.c.bf16 %v591_v4, %v589_v57  ;;  %v593_v30 = vld [vmem:[#allocation8 + $0xe0] sm:$0xff]  ;;  %v3407_v57 = vpack.c.bf16 %v612_v60, %v611_v19 }
 0x1ac   : > { %v609_v4 = vld [vmem:[#allocation10 + $0x60] sm:$0xff] }
 0x1ae   : > { %2207 = vmatpush1.bf16.msra.mxu1 %v3337_v14  ;;  %v595_v14 = vld [vmem:[#allocation8 + $0xf0] sm:$0xff] }
 0x1af   : > { %2209 = vmatprep.subr.bf16.mxu1 %v3340_v17  ;;  %v3355_v21 = vpack.c.bf16 %v595_v14, %v593_v30  ;;  %v610_v14 = vld [vmem:[#allocation10 + $0x68] sm:$0xff] }
 0x1b0   : > { %v3402_v49 = vpack.c.bf16 %v610_v14, %v609_v4 }
 0x1b2   : > { %2211 = vmatpush1.bf16.msra.mxu1 %v3343_v59 }
 0x1b3   : > { %2213 = vmatprep.subr.bf16.mxu1 %v3346_v48 }
 0x1b6   : > { %2215 = vmatpush1.bf16.msra.mxu1 %v3349_v50 }
 0x1b7   : > { %2217 = vmatprep.subr.bf16.mxu1 %v3352_v8 }
 0x1ba   : > { %2219 = vmatpush1.bf16.msra.mxu1 %v3355_v21 }
 0x1bb   : > { %2253 = vmatprep.subr.bf16.mxu1 %v3119_v20  ;;  %v597_v20 = vld [vmem:[#allocation10] sm:$0xff] }
 0x1bd   : > { %1123 = vmatmul.mubr.f32.vlgmr.msra.gmra.mrb[0].mxu1 %v3246_v13 }
 0x1be   : > { %1128 = vmatprep.mubr.f32.mxu1 %v3691_v16  ;;  %2255 = vmatpush1.bf16.msra.mxu1 %v3121_v24  ;;  %v598_v24 = vld [vmem:[#allocation10 + $0x8] sm:$0xff] }
 0x1bf   : > { %2257 = vmatprep.subr.bf16.mxu1 %v3129_v29  ;;  %v3380_v29 = vpack.c.bf16 %v598_v24, %v597_v20  ;;  %v887_v20 = vrot.slane %v614_v54, %v3230_v1  ;;  %v1055_v24 = vrot.slane %v615_v62, %v3230_v1 }
 0x1c1   : > { %1129 = vmatmul.mubr.f32.gmra.mrb[2].mxu1 %v3241_v10  ;;  %2221 = vmatprep.subr.bf16.mxu0 %v3380_v29 }
 0x1c2   : > { %2259 = vmatpush1.bf16.msra.mxu1 %v3131_v33  ;;  %1420 = vmatprep.mubr.f32.mxu1 %v3691_v16  ;;  %v599_v33 = vld [vmem:[#allocation10 + $0x10] sm:$0xff] }
 0x1c3   : > { %2261 = vmatprep.subr.bf16.mxu1 %v3139_v37  ;;  %2223 = vmatpush3.bf16.msra.mxu0 %v3380_v29  ;;  %v600_v37 = vld [vmem:[#allocation10 + $0x18] sm:$0xff] }
 0x1c6   : > { %2263 = vmatpush1.bf16.msra.mxu1 %v3141_v40  ;;  %v3384_v40 = vpack.c.bf16 %v600_v37, %v599_v33  ;;  %v3421_v33 = vadd.f32 %v1055_v24, %v887_v20 }
 0x1c7   : > { %2265 = vmatprep.subr.bf16.mxu1 %v3149_v46  ;;  %v601_v46 = vld [vmem:[#allocation10 + $0x20] sm:$0xff] }
 0x1c8   : > { %2225 = vmatprep.subr.bf16.mxu0 %v3384_v40 }
 0x1c9   : > { %2227 = vmatpush3.bf16.msra.mxu0 %v3384_v40 }
 0x1ca   : > { %2267 = vmatpush1.bf16.msra.mxu1 %v3152_v51  ;;  %v602_v51 = vld [vmem:[#allocation10 + $0x28] sm:$0xff] }
 0x1cb   : > { %2269 = vmatprep.subr.bf16.mxu1 %v3158_v55  ;;  %v3388_v55 = vpack.c.bf16 %v602_v51, %v601_v46 }
 0x1cd   : > { %2229 = vmatprep.subr.bf16.mxu0 %v3388_v55 }
 0x1ce   : > { %2271 = vmatpush1.bf16.msra.mxu1 %v3161_v58  ;;  %2231 = vmatpush3.bf16.msra.mxu0 %v3388_v55  ;;  %v603_v58 = vld [vmem:[#allocation10 + $0x30] sm:$0xff] }
 0x1cf   : > { %2273 = vmatprep.subr.bf16.mxu1 %v3168_v0  ;;  %v604_v0 = vld [vmem:[#allocation10 + $0x38] sm:$0xff] }
 0x1d2   : > { %2275 = vmatpush1.bf16.msra.mxu1 %v3171_v3  ;;  %v3392_v3 = vpack.c.bf16 %v604_v0, %v603_v58 }
 0x1d3   : > { %2277 = vmatprep.subr.bf16.mxu1 %v3178_v9  ;;  %v605_v9 = vld [vmem:[#allocation10 + $0x40] sm:$0xff] }
 0x1d4   : > { %2233 = vmatprep.subr.bf16.mxu0 %v3392_v3 }
 0x1d5   : > { %2235 = vmatpush3.bf16.msra.mxu0 %v3392_v3 }
 0x1d6   : > { %2279 = vmatpush1.bf16.msra.mxu1 %v3181_v12  ;;  %v606_v12 = vld [vmem:[#allocation10 + $0x48] sm:$0xff] }
 0x1d7   : > { %2281 = vmatprep.subr.bf16.mxu1 %v3188_v18  ;;  %v3396_v18 = vpack.c.bf16 %v606_v12, %v605_v9 }
 0x1d9   : > { %2237 = vmatprep.subr.bf16.mxu0 %v3396_v18 }
 0x1da   : > { %2283 = vmatpush1.bf16.msra.mxu1 %v3191_v22  ;;  %v607_v22 = vld [vmem:[#allocation10 + $0x50] sm:$0xff]  ;;  %2239 = vmatpush3.bf16.msra.mxu0 %v3396_v18 }
 0x1db   : > { %2317 = vmatprep.subr.bf16.mxu1 %v3198_v31  ;;  %v608_v31 = vld [vmem:[#allocation10 + $0x58] sm:$0xff] }
 0x1dc   : > { %v3400_v30 = vpack.c.bf16 %v608_v31, %v607_v22 }
 0x1de   : > { %2241 = vmatprep.subr.bf16.mxu0 %v3400_v30 }
 0x1df   : > { %2243 = vmatpush3.bf16.msra.mxu0 %v3400_v30 }
 0x1e0   : > { %2245 = vmatprep.subr.bf16.mxu0 %v3402_v49 }
 0x1e3   : > { %2247 = vmatpush3.bf16.msra.mxu0 %v3402_v49 }
 0x1e4   : > { %2249 = vmatprep.subr.bf16.mxu0 %v3407_v57 }
 0x1e7   : > { %2251 = vmatpush3.bf16.msra.mxu0 %v3407_v57 }
 0x1e8   : > { %2285 = vmatprep.subr.bf16.mxu0 %v3123_v25 }
 0x290   : > { %v1124_v37 = vpop.f32.mrb[0].mxu1 }
 0x291   : > { %v1126_v46 = vpop.f32.mrb[1].mxu1 }
 0x292   : > { %v2383_v51 = vadd.f32 %v3421_v33, %v1126_v46 }
 0x294   : > { %v1883_v58 = vmul.f32 -1.442695, %v2383_v51  ;;  %v1130_v0 = vpop.f32.mrb[2].mxu1 }
 0x295   : > { %v1132_v9 = vpop.f32.mrb[3].mxu1 }
 0x296   : > { %2534 = vpow2.f32 %v1883_v58  ;;  %v2387_v12 = vadd.f32 %v3421_v33, %v1132_v9 }
 0x298   : > { %v1884_v22 = vmul.f32 -1.442695, %v2387_v12  ;;  %v3450_v12 = vrot.slane %v614_v54, %v3232_v2 }
 0x29a   : > { %2536 = vpow2.f32 %v1884_v22 }
 0x2a0   : > { %v2535_v31 = vpop.eup %2534 }
 0x2a1   : > { %v1157_v4 = vadd.f32 1.0, %v2535_v31 }
 0x2a3   : > { %2538 = vrcp.f32 %v1157_v4 }
 0x2a4   : > { %v2537_v14 = vpop.eup %2536 }
 0x2a5   : > { %v1158_v19 = vadd.f32 1.0, %v2537_v14 }
 0x2a7   : > { %2540 = vrcp.f32 %v1158_v19 }
 0x2ad   : > { %v2539_v60 = vpop.eup %2538 }
 0x2ae   : > { %v1163_v20 = vmul.f32 %v2539_v60, %v3246_v13 }
 0x2b0   : > { %2047 = vmatprep.mubr.f32.mxu0 %v1163_v20 }
 0x2b1   : > { %v2541_v24 = vpop.eup %2540 }
 0x2b2   : > { %v1164_v46 = vmul.f32 %v2541_v24, %v3241_v10 }
 0x2b4   : > { %2048 = vmatmul.mubr.f32.vlgmr.msra.gmra.mrb[2].mxu0 %v1164_v46 }
 0x2b5   : > { %2287 = vmatpush3.bf16.msra.mxu0 %v3123_v25  ;;  %v883_v25 = vrot.slane %v614_v54, %v3228_v63 }
 0x2b6   : > { %2289 = vmatprep.subr.bf16.mxu0 %v3133_v34 }
 0x2b9   : > { %2291 = vmatpush3.bf16.msra.mxu0 %v3133_v34  ;;  %v1051_v34 = vrot.slane %v615_v62, %v3228_v63  ;;  %v3455_v62 = vld [vmem:[%s3695_s17] ss:$0 sm:$0xff] }
 0x2ba   : > { %2293 = vmatprep.subr.bf16.mxu0 %v3144_v43 }
 0x2bd   : > { %2295 = vmatpush3.bf16.msra.mxu0 %v3144_v43  ;;  %v3445_v43 = vadd.f32 %v1051_v34, %v883_v25 }
 0x2be   : > { %2297 = vmatprep.subr.bf16.mxu0 %v3154_v52 }
 0x2c1   : > { %2299 = vmatpush3.bf16.msra.mxu0 %v3154_v52  ;;  %v2385_v52 = vadd.f32 %v3445_v43, %v1130_v0 }
 0x2c2   : > { %2301 = vmatprep.subr.bf16.mxu0 %v3164_v61 }
 0x2c5   : > { %2303 = vmatpush3.bf16.msra.mxu0 %v3164_v61  ;;  %v2381_v61 = vadd.f32 %v3445_v43, %v1124_v37 }
 0x2c6   : > { %2305 = vmatprep.subr.bf16.mxu0 %v3174_v6 }
 0x2c7   : > { %v1881_v51 = vmul.f32 -1.442695, %v2381_v61 }
 0x2c9   : > { %2307 = vmatpush3.bf16.msra.mxu0 %v3174_v6  ;;  %v1882_v6 = vmul.f32 -1.442695, %v2385_v52 }
 0x2ca   : > { %2309 = vmatprep.subr.bf16.mxu0 %v3184_v15 }
 0x2cb   : > { %2542 = vpow2.f32 %v1882_v6 }
 0x2cc   : > { %2544 = vpow2.f32 %v1881_v51 }
 0x2cd   : > { %2311 = vmatpush3.bf16.msra.mxu0 %v3184_v15 }
 0x2ce   : > { %2313 = vmatprep.subr.bf16.mxu0 %v3194_v27 }
 0x2d1   : > { %2315 = vmatpush3.bf16.msra.mxu0 %v3194_v27 }
 0x2d2   : > { %2349 = vmatprep.subr.bf16.mxu0 %v3380_v29 }
 0x2d5   : > { %v2543_v15 = vpop.eup %2542 }
 0x2d6   : > { %v2545_v58 = vpop.eup %2544  ;;  %v1144_v9 = vadd.f32 1.0, %v2543_v15 }
 0x2d7   : > { %v1143_v27 = vadd.f32 1.0, %v2545_v58 }
 0x2d8   : > { %2546 = vrcp.f32 %v1144_v9 }
 0x2d9   : > { %2548 = vrcp.f32 %v1143_v27 }
 0x2e2   : > { %v2547_v31 = vpop.eup %2546 }
 0x2e3   : > { %v2549_v14 = vpop.eup %2548  ;;  %v1257_v20 = vsub.f32 1.0, %v2547_v31 }
 0x2e4   : > { %v1256_v46 = vsub.f32 1.0, %v2549_v14 }
 0x2e5   : > { %v1259_v61 = vmul.f32 %v1257_v20, %v3241_v10  ;;  %v3697_v20 = vld [vmem:[#allocation20_spill] sm:$0xff] }
 0x2e6   : > { %v1258_v51 = vmul.f32 %v1256_v46, %v3246_v13 }
 0x387   : > { %v2049_v0 = vpop.f32.mrb[2].mxu0 }
 0x388   : > { %v2388_v37 = vadd.f32 %v2049_v0, %v3450_v12  ;;  %v1231_v22 = vpop.f32.mrb[3].mxu0 }
 0x389   : > { %v2389_v4 = vadd.f32 %v1231_v22, %v3450_v12 }
 0x38a   : > { %v1249_v19 = vadd.f32 %v2388_v37, %v3455_v62 }
 0x38b   : > { %v1248_v60 = vadd.f32 %v2389_v4, %v3455_v62 }
 0x38c   : > { %v1251_v54 = vmul.f32 %v1249_v19, %v3217_v45 }
 0x38d   : > { %v1250_v24 = vmul.f32 %v1248_v60, %v3211_v41 }
 0x38e   : > { %v1253_v25 = vmax.f32 %v1251_v54, 0.0 }
 0x38f   : > { %v1252_v34 = vmax.f32 %v1250_v24, 0.0 }
 0x390   : > { %v1255_v52 = vmul.f32 %v2547_v31, %v1253_v25  ;;  %v3698_v25 = vld [vmem:[#allocation21_spill] sm:$0xff] }
 0x391   : > { %v1254_v6 = vmul.f32 %v2549_v14, %v1252_v34 }
 0x392   : > { %v3465_v15 = vadd.f32 %v1259_v61, %v1255_v52 }
 0x393   : > { %v3467_v58 = vadd.f32 %v1258_v51, %v1254_v6  ;;  %v3700_v6 = vld [vmem:[#allocation25_spill] sm:$0xff] }
 0x394   : > { %v1269_v9 = vrot.slane %v3465_v15, %v3228_v63  ;;  %v1279_v10 = vrot.slane %v3465_v15, %v3230_v1  ;;  %v1291_v4 = vrot.slane %v3465_v15, %v3232_v2  ;;  %v1303_v14 = vrot.slane %v3465_v15, %v3234_v5 }
 0x395   : > { %v1265_v27 = vrot.slane %v3467_v58, %v3228_v63  ;;  %v1275_v0 = vrot.slane %v3467_v58, %v3230_v1  ;;  %v1287_v37 = vrot.slane %v3467_v58, %v3232_v2  ;;  %v1299_v13 = vrot.slane %v3467_v58, %v3234_v5  ;;  %v3696_v1 = vld [vmem:[#allocation22_spill] sm:$0xff] }
 0x396   : > { %v1311_v63 = vrot.slane %v3467_v58, %v3243_v11  ;;  %v1271_v54 = vmul.f32 %v1269_v9, %v3696_v1  ;;  %v1281_v24 = vmul.f32 %v1279_v10, %v3697_v20  ;;  %v1293_v34 = vmul.f32 %v1291_v4, %v3698_v25  ;;  %v3699_v5 = vld [vmem:[#allocation18_spill] sm:$0xff] }
 0x397   : > { %v1270_v22 = vmul.f32 %v1265_v27, %v3215_v44  ;;  %v1280_v31 = vmul.f32 %v1275_v0, %v3203_v35  ;;  %v1292_v60 = vmul.f32 %v1287_v37, %v3205_v36  ;;  %v1304_v44 = vmul.f32 %v1299_v13, %v3219_v47  ;;  %v3701_v27 = vld [vmem:[#allocation24_spill] sm:$0xff]  ;;  %v3702_v37 = vld [vmem:[#allocation19_spill] sm:$0xff]  ;;  %v3703_v13 = vld [vmem:[#allocation26_spill] sm:$0xff] }
 0x398   : > { %v1323_v35 = vrot.slane %v3467_v58, %v3258_v26  ;;  %v1283_v2 = vadd.f32 %v1281_v24, %v1271_v54  ;;  %v1315_v52 = vrot.slane %v3465_v15, %v3243_v11  ;;  %v1316_v61 = vmul.f32 %v1311_v63, %v3699_v5  ;;  %v3704_v11 = vld [vmem:[#allocation23_spill] sm:$0xff] }
 0x399   : > { %v1282_v19 = vadd.f32 %v1280_v31, %v1270_v22  ;;  %v1335_v36 = vrot.slane %v3467_v58, %v3700_v6  ;;  %v1305_v0 = vmul.f32 %v1303_v14, %v3701_v27  ;;  %v1327_v47 = vrot.slane %v3465_v15, %v3258_v26  ;;  %v3705_v14 = vld [vmem:[#allocation27_spill] sm:$0xff] }
 0x39a   : > { %v1295_v9 = vadd.f32 %v1293_v34, %v1283_v2  ;;  %v1328_v10 = vmul.f32 %v1323_v35, %v3702_v37  ;;  %v1347_v22 = vrot.slane %v3467_v58, %v3703_v13  ;;  %v1339_v63 = vrot.slane %v3465_v15, %v3700_v6 }
 0x39b   : > { %v1294_v46 = vadd.f32 %v1292_v60, %v1282_v19  ;;  %v1317_v19 = vmul.f32 %v1315_v52, %v3704_v11  ;;  %v1340_v60 = vmul.f32 %v1335_v36, %v3226_v53  ;;  %v1329_v20 = vmul.f32 %v1327_v47, %v3705_v14 }
 0x39c   : > { %v1307_v4 = vadd.f32 %v1305_v0, %v1295_v9  ;;  %v1351_v26 = vrot.slane %v3465_v15, %v3703_v13 }
 0x39d   : > { %v1306_v51 = vadd.f32 %v1304_v44, %v1294_v46  ;;  %v1352_v44 = vmul.f32 %v1347_v22, %v3213_v42  ;;  %v3706_v46 = vld [vmem:[#allocation28_spill] sm:$0xff]  ;;  %v3709_v42 = vld [vmem:[#allocation31_spill] sm:$0xff] }
 0x39e   : > { %v1319_v54 = vadd.f32 %v1317_v19, %v1307_v4  ;;  %v1341_v2 = vmul.f32 %v1339_v63, %v3706_v46  ;;  %v1353_v52 = vmul.f32 %v1351_v26, %v3307_v23 }
 0x39f   : > { %v1318_v31 = vadd.f32 %v1316_v61, %v1306_v51 }
 0x3a0   : > { %v1331_v35 = vadd.f32 %v1329_v20, %v1319_v54 }
 0x3a1   : > { %v1330_v1 = vadd.f32 %v1328_v10, %v1318_v31 }
 0x3a2   : > { %v1343_v34 = vadd.f32 %v1341_v2, %v1331_v35 }
 0x3a3   : > { %v1342_v24 = vadd.f32 %v1340_v60, %v1330_v1 }
 0x3a4   : > { %v1355_v53 = vadd.f32 %v1353_v52, %v1343_v34 }
 0x3a5   : > { %v1354_v25 = vadd.f32 %v1352_v44, %v1342_v24 }
 0x3a7   : > { %1421 = vmatmul.mubr.f32.vlgmr.msra.gmra.mrb[4].mxu1 %v1354_v25  ;;  %2082 = vmatprep.mubr.f32.mxu0 %v1354_v25 }
 0x3a8   : > { %2319 = vmatpush1.bf16.msra.mxu1 %v3312_v39  ;;  %1426 = vmatprep.mubr.f32.mxu1 %v3691_v16  ;;  %v3708_v39 = vld [vmem:[#allocation30_spill] sm:$0xff] }
 0x3a9   : > { %2083 = vmatmul.mubr.f32.vlgmr.msra.gmra.mrb[4].mxu0 %v1355_v53  ;;  %2321 = vmatprep.subr.bf16.mxu1 %v3314_v38  ;;  %v3707_v38 = vld [vmem:[#allocation29_spill] sm:$0xff] }
 0x3aa   : > { %2351 = vmatpush3.bf16.msra.mxu0 %v3380_v29 }
 0x3ab   : > { %1427 = vmatmul.mubr.f32.gmra.mrb[6].mxu1 %v1355_v53  ;;  %2353 = vmatprep.subr.bf16.mxu0 %v3384_v40 }
 0x3ac   : > { %2323 = vmatpush1.bf16.msra.mxu1 %v3317_v7  ;;  %1572 = vmatprep.mubr.f32.mxu1 %v3691_v16 }
 0x3ad   : > { %2325 = vmatprep.subr.bf16.mxu1 %v3321_v56 }
 0x3ae   : > { %2355 = vmatpush3.bf16.msra.mxu0 %v3384_v40 }
 0x3af   : > { %2357 = vmatprep.subr.bf16.mxu0 %v3388_v55 }
 0x3b0   : > { %2327 = vmatpush1.bf16.msra.mxu1 %v3324_v32 }
 0x3b1   : > { %2329 = vmatprep.subr.bf16.mxu1 %v3328_v28 }
 0x3b2   : > { %2359 = vmatpush3.bf16.msra.mxu0 %v3388_v55 }
 0x3b3   : > { %2361 = vmatprep.subr.bf16.mxu0 %v3392_v3 }
 0x3b4   : > { %2331 = vmatpush1.bf16.msra.mxu1 %v3707_v38 }
 0x3b5   : > { %2333 = vmatprep.subr.bf16.mxu1 %v3708_v39 }
 0x3b6   : > { %2363 = vmatpush3.bf16.msra.mxu0 %v3392_v3 }
 0x3b7   : > { %2365 = vmatprep.subr.bf16.mxu0 %v3396_v18 }
 0x3b8   : > { %2335 = vmatpush1.bf16.msra.mxu1 %v3709_v42 }
 0x3b9   : > { %2337 = vmatprep.subr.bf16.mxu1 %v3340_v17 }
 0x3ba   : > { %2367 = vmatpush3.bf16.msra.mxu0 %v3396_v18 }
 0x3bb   : > { %2369 = vmatprep.subr.bf16.mxu0 %v3400_v30 }
 0x3bc   : > { %2339 = vmatpush1.bf16.msra.mxu1 %v3343_v59 }
 0x3bd   : > { %2341 = vmatprep.subr.bf16.mxu1 %v3346_v48 }
 0x3be   : > { %2371 = vmatpush3.bf16.msra.mxu0 %v3400_v30 }
 0x3bf   : > { %2373 = vmatprep.subr.bf16.mxu0 %v3402_v49 }
 0x3c0   : > { %2343 = vmatpush1.bf16.msra.mxu1 %v3349_v50 }
 0x3c1   : > { %2345 = vmatprep.subr.bf16.mxu1 %v3352_v8 }
 0x3c2   : > { %2375 = vmatpush3.bf16.msra.mxu0 %v3402_v49 }
 0x3c3   : > { %2377 = vmatprep.subr.bf16.mxu0 %v3407_v57 }
 0x3c4   : > { %2347 = vmatpush1.bf16.msra.mxu1 %v3355_v21 }
 0x3c6   : > { %2379 = vmatpush3.bf16.msra.mxu0 %v3407_v57 }
 0x3c7   : > { %1573 = vmatmul.mubr.f32.vlgmr.msra.gmra.mrb[4].mxu1 %v3467_v58 }
 0x3c8   : > { %1578 = vmatprep.mubr.f32.mxu1 %v3691_v16 }
 0x3cb   : > { %1579 = vmatmul.mubr.f32.gmra.mrb[6].mxu1 %v3465_v15 }
 0x49a   : > { %v1574_v23 = vpop.f32.mrb[4].mxu1 }
 0x49b   : > { %v1576_v7 = vpop.f32.mrb[5].mxu1  ;;  %v2391_v30 = vadd.f32 %v3445_v43, %v1574_v23 }
 0x49c   : > { %v2393_v56 = vadd.f32 %v3421_v33, %v1576_v7 }
 0x49d   : > { %v1886_v57 = vmul.f32 -1.442695, %v2391_v30 }
 0x49e   : > { %v1888_v32 = vmul.f32 -1.442695, %v2393_v56  ;;  %v1580_v28 = vpop.f32.mrb[6].mxu1 }
 0x49f   : > { %v1582_v17 = vpop.f32.mrb[7].mxu1  ;;  %v2395_v18 = vadd.f32 %v3445_v43, %v1580_v28 }
 0x4a0   : > { %2550 = vpow2.f32 %v1888_v32  ;;  %v2397_v59 = vadd.f32 %v3421_v33, %v1582_v17 }
 0x4a1   : > { %v1887_v49 = vmul.f32 -1.442695, %v2395_v18 }
 0x4a2   : > { %v1889_v48 = vmul.f32 -1.442695, %v2397_v59 }
 0x4a4   : > { %2552 = vpow2.f32 %v1889_v48 }
 0x4aa   : > { %v2551_v50 = vpop.eup %2550 }
 0x4ab   : > { %v1607_v8 = vadd.f32 1.0, %v2551_v50 }
 0x4ad   : > { %2554 = vrcp.f32 %v1607_v8 }
 0x4ae   : > { %v2553_v21 = vpop.eup %2552 }
 0x4af   : > { %v1608_v29 = vadd.f32 1.0, %v2553_v21 }
 0x4b1   : > { %2556 = vrcp.f32 %v1608_v29 }
 0x4b2   : > { %2558 = vpow2.f32 %v1887_v49 }
 0x4b3   : > { %2560 = vpow2.f32 %v1886_v57 }
 0x4b7   : > { %v2555_v16 = vpop.eup %2554 }
 0x4b8   : > { %v1613_v40 = vmul.f32 %v2555_v16, %v3467_v58 }
 0x4ba   : > { %2117 = vmatprep.mubr.f32.mxu0 %v1613_v40 }
 0x4bb   : > { %v2557_v55 = vpop.eup %2556 }
 0x4bc   : > { %v1614_v3 = vmul.f32 %v2557_v55, %v3465_v15  ;;  %v2559_v33 = vpop.eup %2558 }
 0x4bd   : > { %v2561_v5 = vpop.eup %2560  ;;  %v1594_v61 = vadd.f32 1.0, %v2559_v33 }
 0x4be   : > { %2118 = vmatmul.mubr.f32.vlgmr.msra.gmra.mrb[4].mxu0 %v1614_v3  ;;  %v1593_v6 = vadd.f32 1.0, %v2561_v5 }
 0x4bf   : > { %2562 = vrcp.f32 %v1594_v61 }
 0x4c0   : > { %2564 = vrcp.f32 %v1593_v6 }
 0x4c9   : > { %v2563_v27 = vpop.eup %2562 }
 0x4ca   : > { %v2565_v43 = vpop.eup %2564  ;;  %v1701_v13 = vsub.f32 1.0, %v2563_v27 }
 0x4cb   : > { %v1700_v31 = vsub.f32 1.0, %v2565_v43 }
 0x4cc   : > { %v1703_v19 = vmul.f32 %v1701_v13, %v3465_v15 }
 0x591   : > { %v2119_v36 = vpop.f32.mrb[4].mxu0 }
 0x592   : > { %v2398_v51 = vadd.f32 %v2119_v36, %v3450_v12  ;;  %v1681_v9 = vpop.f32.mrb[5].mxu0 }
 0x593   : > { %v2399_v0 = vadd.f32 %v1681_v9, %v3450_v12 }
 0x594   : > { %v1693_v47 = vadd.f32 %v2398_v51, %v3455_v62 }
 0x595   : > { %v1692_v37 = vadd.f32 %v2399_v0, %v3455_v62  ;;  %v1702_v62 = vmul.f32 %v1700_v31, %v3467_v58 }
 0x596   : > { %v1695_v10 = vmul.f32 %v1693_v47, %v3217_v45 }
 0x597   : > { %v1694_v22 = vmul.f32 %v1692_v37, %v3211_v41 }
 0x598   : > { %v1697_v4 = vmax.f32 %v1695_v10, 0.0 }
 0x599   : > { %v1696_v11 = vmax.f32 %v1694_v22, 0.0 }
 0x59a   : > { %v1699_v12 = vmul.f32 %v2563_v27, %v1697_v4 }
 0x59b   : > { %v1698_v63 = vmul.f32 %v2565_v43, %v1696_v11 }
 0x59c   : > { %v1705_v60 = vadd.f32 %v1703_v19, %v1699_v12 }
 0x59d   : > { %v1704_v41 = vadd.f32 %v1702_v62, %v1698_v63 }
 0x59e   : > { %1707 = vst [vmem:[%s494_s3 + $0x8] sm:$0xff] %v1705_v60 }
 0x59f   : > { %1706 = vst [vmem:[%s494_s3] sm:$0xff] %v1704_v41 }
 0x5a0   : > { %2721 = shalt.err (!%p2718_p9)
}
 0x5a1   : > { %s2722_s23 = scalar_lea.hbm %s3572_s27, 256  ;;  %s2726_s30 = scalar_lea.hbm %s3710_s11, 512 }
 0x5a2   : > { %p2723_p0 = scmp.ne.s32.totalorder %s3572_s27, %s2722_s23  ;;  %p2727_p8 = scmp.lt.u32.totalorder %s3572_s27, %s3710_s11 }
 0x5a3   : > { %p2728_p6 = scmp.lt.u32.totalorder %s2726_s30, %s2722_s23  ;;  %p2730_p5 = scmp.lt.u32.totalorder %s2722_s23, %s3572_s27 }
 0x5a4   : > { %p2724_p11 = pnand %p2723_p0, %p3029_p10 }
 0x5a5   : > { %p2729_p3 = por %p2728_p6, %p2727_p8 }
 0x5a6   : > { %p2725_p4 = pneg %p2724_p11 }
 0x5a7   : > { %p2731_p7 = por %p2730_p5, %p2729_p3 }
 0x5a9   : > { %p2732_p12 = pnand %p2731_p7, %p2725_p4 }
 0x5ab   : > { %2735 = shalt.err (!%p2732_p12)
}
 0x5ac   : > { %s2805_s29 = smov 128   ;;  %s2806_s12 = smov 8  }
 0x5ad   : > { %2430 = dma.vmem_to_hbm [thread:$0]  (%p3029_p10), %s3574_s28, 256, %s3572_s27, %s1709_s21, %s2805_s29, %s2805_s29, %s2806_s12  }
 0x5ae PF: > { %s3711_s16 = sld [smem:[#allocation16_spill]]  ;;  %s3712_s14 = sld [smem:[#allocation17_spill]] }
 0x5af   : > { %p3714_p2 = scmp.ge.s32.totalorder %s2782_s20, 2 }
 0x5b4   : > { %s1737_s25 = sand.u32 1, %s3711_s16   ;;  %p3713_p1 = scmp.ne.s32.totalorder %s3712_s14, 0 }
 0x5b5   : > { %s1738_s23 = scalar_lea.sflag [#allocation4], %s1737_s25 }
 0x5b6   : > { %p2450_p13 = pnand %p3714_p2, %p3713_p1 }
 0x5b8   : > { %2765 = dma.done.wait (!%p2450_p13), %s1738_s23, 256  }
 0x5b9   : > { %2767 = vsyncadd (!%p2450_p13), %s1738_s23, 4294967040  ;;  %p26_p9 = scmp.ge.s32.totalorder %s3019_s22, 4   ;;  %s3715_s17 = smov %s2774_s18 }
 0x5ba   : > { %s3716_s18 = smov %s2778_s19  ;;  %s3717_s19 = smov %s3035_s15 }
 0x5bb   : > { %s3718_s20 = smov %s3019_s22  ;;  %28 = sbr.rel (!%p26_p9) target bundleno = 11 (0xb), region = 131 }
 0x5c2   :  { %1743 = vsyncpa [#allocation3], 1 }
 0x5c3   :  { %1745 = vsyncpa [#allocation3 + $0x1], 1 }
 0x5c4   :  { %1746 = vsyncpa [#allocation6], 1 }
 0x5c5   :  { %1747 = vsyncpa [#allocation9], 1 }
 0x5c6   :  { %1748 = vsyncpa [#allocation4], 1 }
 0x5c7   :  { %1750 = vsyncpa [#allocation4 + $0x1], 1 }

</bundles_post_ra>
